<compile_context>
chip_gen: v7x
topology: tpu7x:2x2x1
jax: 0.10.0
libtpu: 0.0.40
codegen_flags: <defaults>
</compile_context>

<pallas_src>
import functools

import jax
import jax.numpy as jnp
from jax import lax
from jax.experimental import pallas as pl
from jax.experimental.pallas import tpu as pltpu

# ---- static problem configuration (small, consistent with the module) ----
N = 2          # batch
C = 32         # D_in == D_out
V = 5          # skeleton nodes (square adjacency -> downsample == identity)
T = 8          # temporal length
K = 2          # mta_adj.shape[0] (SimpleGC computation kernel size)
KS = 5         # mta_time_kernel_size (depthwise temporal conv, 'same' padding)
P = 3          # MTA: part - 1 processed branches
C4 = C // 4
CV = C * V     # 160 lanes
CV4 = C4 * V   # 40 lanes per branch
G1 = 32        # GroupNorm(32, C)
G2 = 8         # GroupNorm(8, C // 4)
PAD = KS // 2
EPS = 1e-5
SLOPE = 0.2


def _leaky(z):
    return jnp.maximum(z, SLOPE * z)


def _dblock_kernel(x_ref, gamma1_ref, beta1_ref, gmr1_ref, gsp1_ref,
                   coef_ref, cbl_ref, ebt_ref, gmr2_ref, gsp2_ref,
                   mgl_ref, mbl_ref, out_ref):
    """One batch block per grid step.  x_ref/out_ref: (NB, T, C*V), lane-dense."""
    x = x_ref[...]                                            # (NB, T, CV)
    nb = x.shape[0]
    ks_eff = coef_ref.shape[0]

    # --- GroupNorm(32, C) + LeakyReLU(0.2), vectorized over all lanes ---
    # sublane reduce over T; group reduce/spread via indicator matmuls with the
    # [sum, sum-of-squares] rows batched into one MXU dot (halves MXU round trips).
    st = jnp.sum(x, axis=1)                                   # (NB, CV)
    sq = jnp.sum(x * x, axis=1)                               # (NB, CV)
    stats_g = jnp.dot(jnp.concatenate([st, sq], axis=0), gmr1_ref[...],
                      preferred_element_type=jnp.float32)     # (2*NB, G1)
    mean_g = stats_g[:nb]
    var_g = stats_g[nb:] - mean_g * mean_g
    spread = jnp.dot(jnp.concatenate([mean_g, var_g], axis=0), gsp1_ref[...],
                     preferred_element_type=jnp.float32)      # (2*NB, CV)
    mean_l = spread[:nb]
    rstd_l = lax.rsqrt(spread[nb:] + EPS)
    scale_l = gamma1_ref[...] * rstd_l                        # (NB, CV)
    shift_l = beta1_ref[...] - mean_l * scale_l               # (NB, CV)
    x1 = _leaky(x * scale_l[:, None, :] + shift_l[:, None, :])  # (NB, T, CV)

    coef = coef_ref[...]                                      # (ks_eff, T, CV4)

    outs = []
    state = None
    for i in range(P):
        lo = i * CV4
        xi = x1[:, :, lo:lo + CV4]                            # (NB, T, CV4)
        s = xi if i == 0 else state + xi

        # depthwise 'same' temporal conv: only the non-zero taps; the padding validity
        # mask is folded into coef, so circular sublane shifts are safe.
        terms = []
        for j in range(ks_eff):
            d = j - PAD
            rolled = s if d == 0 else jnp.roll(s, -d, axis=1)
            terms.append(coef[j][None] * rolled)              # (NB, T, CV4)
        while len(terms) > 1:                                 # tree-reduce the tap sum
            nxt = [terms[k] + terms[k + 1] for k in range(0, len(terms) - 1, 2)]
            if len(terms) % 2:
                nxt.append(terms[-1])
            terms = nxt
        conv = terms[0] + cbl_ref[i][None]                    # (NB, T, CV4)

        # SimpleGC folded with the adjacency: one (NB*T, CV4)@(CV4, CV4) matmul per branch
        # (reshape only merges leading dims -> free).
        y = jnp.dot(conv.reshape(nb * T, CV4), ebt_ref[i],
                    preferred_element_type=jnp.float32).reshape(nb, T, CV4)

        # GroupNorm(8, C//4) + LeakyReLU(0.2), stats batched as above
        su = jnp.sum(y, axis=1)                               # (NB, CV4)
        sq2 = jnp.sum(y * y, axis=1)
        stats2 = jnp.dot(jnp.concatenate([su, sq2], axis=0), gmr2_ref[...],
                         preferred_element_type=jnp.float32)  # (2*NB, G2)
        m_g = stats2[:nb]
        v_g = stats2[nb:] - m_g * m_g
        spread2 = jnp.dot(jnp.concatenate([m_g, v_g], axis=0), gsp2_ref[...],
                          preferred_element_type=jnp.float32)  # (2*NB, CV4)
        m_l = spread2[:nb]
        r_l = lax.rsqrt(spread2[nb:] + EPS)
        sc_l = mgl_ref[i] * r_l                               # (NB, CV4)
        sh_l = mbl_ref[i] - m_l * sc_l
        act = _leaky(y * sc_l[:, None, :] + sh_l[:, None, :])  # (NB, T, CV4)
        state = act                                           # feeds the next branch

        outs.append(_leaky(act + x[:, :, lo:lo + CV4]))       # residual (identity) + relu2

    # last split passes through MTA untouched
    lo = P * CV4
    outs.append(_leaky(x1[:, :, lo:] + x[:, :, lo:]))

    # single lane-dense store of the whole output slab
    out_ref[...] = jnp.concatenate(outs, axis=-1)


def d_block_prepare(gn_g, gn_b, wtaps, cb, Wgc, A, mg, mb):
    """Weight-only preprocessing, hoisted out of the per-call path (run once at init)."""
    f32 = jnp.float32

    g1 = C // G1
    g2 = C4 // G2
    lane_g1 = (jnp.arange(CV) // V) // g1
    gmr1 = (lane_g1[:, None] == jnp.arange(G1)[None, :]).astype(f32) / (g1 * V * T)  # (CV, G1)
    gsp1 = (jnp.arange(G1)[:, None] == lane_g1[None, :]).astype(f32)                 # (G1, CV)
    lane_g2 = (jnp.arange(CV4) // V) // g2
    gmr2 = (lane_g2[:, None] == jnp.arange(G2)[None, :]).astype(f32) / (g2 * V * T)  # (CV4, G2)
    gsp2 = (jnp.arange(G2)[:, None] == lane_g2[None, :]).astype(f32)                 # (G2, CV4)

    gamma1 = jnp.repeat(gn_g.astype(f32), V).reshape(1, CV)
    beta1 = jnp.repeat(gn_b.astype(f32), V).reshape(1, CV)
    mgl = jnp.repeat(mg.astype(f32), V, axis=1).reshape(P, 1, CV4)
    mbl = jnp.repeat(mb.astype(f32), V, axis=1).reshape(P, 1, CV4)
    cbl = jnp.repeat(cb.astype(f32), V, axis=1).reshape(P, 1, CV4)

    # Prune trailing all-zero taps of the fixed depthwise conv weight (the module's
    # MTA.__init__ only populates taps 0..2) so the kernel never rolls/FMAs zeros.
    wt = jnp.asarray(wtaps, f32)
    ks_eff = KS
    try:
        nz_taps = jnp.any(wt != 0, axis=0)                    # (KS,)
        while ks_eff > 1 and not bool(nz_taps[ks_eff - 1]):
            ks_eff -= 1
    except Exception:                                         # abstract/traced weights: keep all taps
        ks_eff = KS

    # per-lane tap coefficients with the 'same'-padding validity mask folded in:
    #   coef[j, t, c*V + v] = wtaps[c, j] * 1[0 <= t + j - PAD < T]
    off = jnp.arange(ks_eff)[:, None] - PAD + jnp.arange(T)[None, :]      # (ks_eff, T)
    valid = ((off >= 0) & (off < T)).astype(f32)
    w_l = jnp.repeat(wt[:, :ks_eff].T, V, axis=1)                          # (ks_eff, CV4)
    coef = valid[:, :, None] * w_l[:, None, :]                             # (ks_eff, T, CV4)

    # Fold the adjacency into each SimpleGC grouped 1x1 conv weight, transposed so the
    # kernel can right-multiply: y[n,t,(c,v)] = sum_{(c2,w)} conv[n,t,(c2,w)] * EbT[(c2,w),(c,v)]
    Wg = Wgc.astype(f32).reshape(P, V, C4, K, C4)
    ebt = jnp.einsum('kwv,iwckb->ibwcv', A.astype(f32), Wg).reshape(P, CV4, CV4)

    return (gamma1, beta1, gmr1, gsp1, coef, cbl, ebt, gmr2, gsp2, mgl, mbl)


def _use_batch_grid():
    """Shard the (per-sample-independent) batch across TensorCores only on multi-TC chips."""
    try:
        kind = jax.devices()[0].device_kind.lower()
    except Exception:
        return False
    return ("v7" in kind) or ("7x" in kind)


@functools.partial(jax.jit, static_argnames=("split_batch",))
def d_block_apply_lane_dense(xl, params, split_batch=False):
    """Fused D_Block on lane-dense activations xl: (N, T, C*V) -> (N, T, C*V).

    Stacked D_Blocks should carry this layout between calls so the NCVT<->NTCV
    transposes are paid only at the ends of the stack.
    """
    (gamma1, beta1, gmr1, gsp1, coef, cbl, ebt, gmr2, gsp2, mgl, mbl) = params

    if split_batch:
        grid = (N,)
        act_spec = pl.BlockSpec((1, T, CV), lambda n: (n, 0, 0))
        semantics = ("parallel",)
    else:
        grid = (1,)
        act_spec = pl.BlockSpec((N, T, CV), lambda n: (0, 0, 0))
        semantics = ("arbitrary",)

    def full(shp):
        nd = len(shp)
        return pl.BlockSpec(shp, lambda n: (0,) * nd)

    return pl.pallas_call(
        _dblock_kernel,
        out_shape=jax.ShapeDtypeStruct((N, T, CV), jnp.float32),
        grid=grid,
        in_specs=[
            act_spec,                     # x (lane-dense)
            full((1, CV)),                # GN gamma, per lane
            full((1, CV)),                # GN beta, per lane
            full((CV, G1)),               # GN group-mean reduce matrix
            full((G1, CV)),               # GN group spread matrix
            full(tuple(coef.shape)),      # temporal-conv tap coefficients (mask folded in)
            full((P, 1, CV4)),            # temporal-conv bias, per lane
            full((P, CV4, CV4)),          # folded SimpleGC weights (adjacency included)
            full((CV4, G2)),              # branch GN reduce matrix
            full((G2, CV4)),              # branch GN spread matrix
            full((P, 1, CV4)),            # branch GN gamma, per lane
            full((P, 1, CV4)),            # branch GN beta, per lane
        ],
        out_specs=act_spec,
        compiler_params=pltpu.CompilerParams(dimension_semantics=semantics),
    )(xl, gamma1, beta1, gmr1, gsp1, coef, cbl, ebt, gmr2, gsp2, mgl, mbl)


def d_block_forward(x, gn_g, gn_b, wtaps, cb, Wgc, A, mg, mb):
    assert x.shape == (N, C, V, T)
    params = d_block_prepare(gn_g, gn_b, wtaps, cb, Wgc, A, mg, mb)
    # lane-dense kernel layout: (N, C, V, T) -> (N, T, C*V)   (layout plumbing only)
    xl = jnp.transpose(x, (0, 3, 1, 2)).reshape(N, T, CV).astype(jnp.float32)
    out = d_block_apply_lane_dense(xl, params, split_batch=_use_batch_grid())
    # back to the module's NCVT layout
    return out.reshape(N, T, C, V).transpose(0, 2, 3, 1)


def _ref_forward(x, gn_g, gn_b, wtaps, cb, Wgc, A, mg, mb):
    """Pure-JAX reference mirroring the PyTorch forward (SVC treated as identity)."""
    pad = KS // 2
    h = x
    mu = h.mean(axis=(2, 3), keepdims=True)
    var = ((h - mu) ** 2).mean(axis=(2, 3), keepdims=True)
    h = (h - mu) * lax.rsqrt(var + EPS) * gn_g[None, :, None, None] + gn_b[None, :, None, None]
    h = jnp.where(h >= 0, h, SLOPE * h)

    outs = []
    s = None
    for i in range(P):
        xi = h[:, i * C4:(i + 1) * C4]
        s = xi if i == 0 else s + xi
        sp = jnp.pad(s, ((0, 0), (0, 0), (0, 0), (pad, pad)))
        conv = jnp.zeros_like(s)
        for j in range(KS):
            conv = conv + wtaps[None, :, None, j:j + 1] * sp[:, :, :, j:j + T]
        conv = conv + cb[i][None, :, None, None]
        Wg = Wgc[i].reshape(V, C4, K, C4)
        g = jnp.einsum('wckb,nbwt->nckwt', Wg, conv)
        y = jnp.einsum('kwv,nckwt->ncvt', A, g)
        mu2 = y.mean(axis=(2, 3), keepdims=True)
        var2 = ((y - mu2) ** 2).mean(axis=(2, 3), keepdims=True)
        y = (y - mu2) * lax.rsqrt(var2 + EPS) * mg[i][None, :, None, None] + mb[i][None, :, None, None]
        y = jnp.where(y >= 0, y, SLOPE * y)
        outs.append(y)
        s = y
    outs.append(h[:, P * C4:])
    out = jnp.concatenate(outs, axis=1) + x          # identity residual / downsample
    return jnp.where(out >= 0, out, SLOPE * out)


if __name__ == "__main__":
    key = jax.random.PRNGKey(0)
    keys = jax.random.split(key, 8)
    x = jax.random.normal(keys[0], (N, C, V, T), dtype=jnp.float32)

    # GroupNorm(32, C) affine params
    gn_g = 1.0 + 0.1 * jax.random.normal(keys[1], (C,), dtype=jnp.float32)
    gn_b = 0.1 * jax.random.normal(keys[2], (C,), dtype=jnp.float32)

    # MTA fixed depthwise conv weight (shared across branches), per module __init__
    wtaps = jnp.zeros((C4, KS), jnp.float32)
    wtaps = wtaps.at[C4 // 8:C4 // 4, 0].set(1.0)
    wtaps = wtaps.at[C4 // 4:, 1].set(1.0)
    wtaps = wtaps.at[:C4 // 8, 2].set(1.0)
    cb = 0.1 * jax.random.normal(keys[3], (P, C4), dtype=jnp.float32)           # Conv1d biases

    # SimpleGC grouped conv weights (one per branch) and adjacency tensor
    Wgc = 0.2 * jax.random.normal(keys[4], (P, V, C4 * K, C4), dtype=jnp.float32)
    A = jax.random.uniform(keys[5], (K, V, V), dtype=jnp.float32) / V

    # MTA GroupNorm(8, C//4) affine params (one per branch)
    mg = 1.0 + 0.1 * jax.random.normal(keys[6], (P, C4), dtype=jnp.float32)
    mb = 0.1 * jax.random.normal(keys[7], (P, C4), dtype=jnp.float32)

    out = d_block_forward(x, gn_g, gn_b, wtaps, cb, Wgc, A, mg, mb)
    out = jax.block_until_ready(out)

    ref = _ref_forward(x, gn_g, gn_b, wtaps, cb, Wgc, A, mg, mb)
    err = float(jnp.max(jnp.abs(out - ref)))
    if out.shape != (N, C, V, T) or not jnp.isfinite(err) or err > 5e-4:
        raise AssertionError(f"Pallas kernel mismatch vs reference: max_abs_err={err}")
    print("KERNEL_OK")
</pallas_src>

<mosaic_0001>
module attributes {stable_mosaic.version = 11 : i64} {
  func.func @_dblock_kernel(%arg0: i32, %arg1: memref<2x8x160xf32, #tpu.memory_space<vmem>>, %arg2: memref<1x160xf32, #tpu.memory_space<vmem>>, %arg3: memref<1x160xf32, #tpu.memory_space<vmem>>, %arg4: memref<160x32xf32, #tpu.memory_space<vmem>>, %arg5: memref<32x160xf32, #tpu.memory_space<vmem>>, %arg6: memref<3x8x40xf32, #tpu.memory_space<vmem>>, %arg7: memref<3x1x40xf32, #tpu.memory_space<vmem>>, %arg8: memref<3x40x40xf32, #tpu.memory_space<vmem>>, %arg9: memref<40x8xf32, #tpu.memory_space<vmem>>, %arg10: memref<8x40xf32, #tpu.memory_space<vmem>>, %arg11: memref<3x1x40xf32, #tpu.memory_space<vmem>>, %arg12: memref<3x1x40xf32, #tpu.memory_space<vmem>>, %arg13: memref<2x8x160xf32, #tpu.memory_space<vmem>>) attributes {dimension_semantics = [#tpu.dimension_semantics<arbitrary>], iteration_bounds = array<i64: 1>, scalar_prefetch = 0 : i64, scratch_operands = 0 : i64, tpu.core_type = #tpu.core_type<tc>, window_params = [{pipeline_mode = #tpu.pipeline_mode<synchronous>, transform_indices = @transform_0, window_bounds = array<i64: 2, 8, 160>}, {pipeline_mode = #tpu.pipeline_mode<synchronous>, transform_indices = @transform_1, window_bounds = array<i64: 1, 160>}, {pipeline_mode = #tpu.pipeline_mode<synchronous>, transform_indices = @transform_2, window_bounds = array<i64: 1, 160>}, {pipeline_mode = #tpu.pipeline_mode<synchronous>, transform_indices = @transform_3, window_bounds = array<i64: 160, 32>}, {pipeline_mode = #tpu.pipeline_mode<synchronous>, transform_indices = @transform_4, window_bounds = array<i64: 32, 160>}, {pipeline_mode = #tpu.pipeline_mode<synchronous>, transform_indices = @transform_5, window_bounds = array<i64: 3, 8, 40>}, {pipeline_mode = #tpu.pipeline_mode<synchronous>, transform_indices = @transform_6, window_bounds = array<i64: 3, 1, 40>}, {pipeline_mode = #tpu.pipeline_mode<synchronous>, transform_indices = @transform_7, window_bounds = array<i64: 3, 40, 40>}, {pipeline_mode = #tpu.pipeline_mode<synchronous>, transform_indices = @transform_8, window_bounds = array<i64: 40, 8>}, {pipeline_mode = #tpu.pipeline_mode<synchronous>, transform_indices = @transform_9, window_bounds = array<i64: 8, 40>}, {pipeline_mode = #tpu.pipeline_mode<synchronous>, transform_indices = @transform_10, window_bounds = array<i64: 3, 1, 40>}, {pipeline_mode = #tpu.pipeline_mode<synchronous>, transform_indices = @transform_11, window_bounds = array<i64: 3, 1, 40>}, {pipeline_mode = #tpu.pipeline_mode<synchronous>, transform_indices = @transform_12, window_bounds = array<i64: 2, 8, 160>}]} {
    %c0 = arith.constant 0 : index
    %c0_0 = arith.constant 0 : index
    %c0_1 = arith.constant 0 : index
    %0 = vector.load %arg1[%c0, %c0_0, %c0_1] : memref<2x8x160xf32, #tpu.memory_space<vmem>>, vector<2x8x160xf32>
    %cst = arith.constant dense<0.000000e+00> : vector<2x160xf32>
    %1 = vector.multi_reduction <add>, %0, %cst [1] : vector<2x8x160xf32> to vector<2x160xf32>
    %2 = arith.mulf %0, %0 : vector<2x8x160xf32>
    %cst_2 = arith.constant dense<0.000000e+00> : vector<2x160xf32>
    %3 = vector.multi_reduction <add>, %2, %cst_2 [1] : vector<2x8x160xf32> to vector<2x160xf32>
    %4 = tpu.concatenate %1, %3 in 0 : vector<2x160xf32>, vector<2x160xf32> -> vector<4x160xf32>
    %c0_3 = arith.constant 0 : index
    %c0_4 = arith.constant 0 : index
    %5 = vector.load %arg4[%c0_3, %c0_4] : memref<160x32xf32, #tpu.memory_space<vmem>>, vector<160x32xf32>
    %cst_5 = arith.constant dense<0.000000e+00> : vector<4x32xf32>
    %6 = tpu.matmul %4, %5, %cst_5 {dimension_numbers = #tpu.dot_dimension_numbers<[1], [0], [0], [1], [0, 0, 1, 1], [], []>} : vector<4x160xf32>, vector<160x32xf32>, vector<4x32xf32> -> vector<4x32xf32>
    %7 = vector.extract_strided_slice %6 {offsets = [0, 0], sizes = [2, 32], strides = [1, 1]} : vector<4x32xf32> to vector<2x32xf32>
    %8 = vector.extract_strided_slice %6 {offsets = [2, 0], sizes = [2, 32], strides = [1, 1]} : vector<4x32xf32> to vector<2x32xf32>
    %9 = arith.mulf %7, %7 : vector<2x32xf32>
    %10 = arith.subf %8, %9 : vector<2x32xf32>
    %11 = tpu.concatenate %7, %10 in 0 : vector<2x32xf32>, vector<2x32xf32> -> vector<4x32xf32>
    %c0_6 = arith.constant 0 : index
    %c0_7 = arith.constant 0 : index
    %12 = vector.load %arg5[%c0_6, %c0_7] : memref<32x160xf32, #tpu.memory_space<vmem>>, vector<32x160xf32>
    %cst_8 = arith.constant dense<0.000000e+00> : vector<4x160xf32>
    %13 = tpu.matmul %11, %12, %cst_8 {dimension_numbers = #tpu.dot_dimension_numbers<[1], [0], [0], [1], [0, 0, 1, 1], [], []>} : vector<4x32xf32>, vector<32x160xf32>, vector<4x160xf32> -> vector<4x160xf32>
    %14 = vector.extract_strided_slice %13 {offsets = [0, 0], sizes = [2, 160], strides = [1, 1]} : vector<4x160xf32> to vector<2x160xf32>
    %15 = vector.extract_strided_slice %13 {offsets = [2, 0], sizes = [2, 160], strides = [1, 1]} : vector<4x160xf32> to vector<2x160xf32>
    %cst_9 = arith.constant 9.99999974E-6 : f32
    %16 = vector.broadcast %cst_9 : f32 to vector<2x160xf32>
    %17 = arith.addf %15, %16 : vector<2x160xf32>
    %18 = math.rsqrt %17 : vector<2x160xf32>
    %c0_10 = arith.constant 0 : index
    %c0_11 = arith.constant 0 : index
    %19 = vector.load %arg2[%c0_10, %c0_11] : memref<1x160xf32, #tpu.memory_space<vmem>>, vector<1x160xf32>
    %20 = vector.broadcast %19 : vector<1x160xf32> to vector<2x160xf32>
    %21 = arith.mulf %20, %18 : vector<2x160xf32>
    %c0_12 = arith.constant 0 : index
    %c0_13 = arith.constant 0 : index
    %22 = vector.load %arg3[%c0_12, %c0_13] : memref<1x160xf32, #tpu.memory_space<vmem>>, vector<1x160xf32>
    %23 = arith.mulf %14, %21 : vector<2x160xf32>
    %24 = vector.broadcast %22 : vector<1x160xf32> to vector<2x160xf32>
    %25 = arith.subf %24, %23 : vector<2x160xf32>
    %26 = vector.shape_cast %21 : vector<2x160xf32> to vector<2x1x160xf32>
    %27 = vector.broadcast %26 : vector<2x1x160xf32> to vector<2x8x160xf32>
    %28 = arith.mulf %0, %27 : vector<2x8x160xf32>
    %29 = vector.shape_cast %25 : vector<2x160xf32> to vector<2x1x160xf32>
    %30 = vector.broadcast %29 : vector<2x1x160xf32> to vector<2x8x160xf32>
    %31 = arith.addf %28, %30 : vector<2x8x160xf32>
    %cst_14 = arith.constant 2.000000e-01 : f32
    %32 = vector.broadcast %cst_14 : f32 to vector<2x8x160xf32>
    %33 = arith.mulf %32, %31 : vector<2x8x160xf32>
    %34 = arith.maximumf %31, %33 : vector<2x8x160xf32>
    %c0_15 = arith.constant 0 : index
    %c0_16 = arith.constant 0 : index
    %c0_17 = arith.constant 0 : index
    %35 = vector.load %arg6[%c0_15, %c0_16, %c0_17] : memref<3x8x40xf32, #tpu.memory_space<vmem>>, vector<3x8x40xf32>
    %36 = vector.extract_strided_slice %34 {offsets = [0, 0, 0], sizes = [2, 8, 40], strides = [1, 1, 1]} : vector<2x8x160xf32> to vector<2x8x40xf32>
    %37 = vector.extract_strided_slice %36 {offsets = [0, 6, 0], sizes = [2, 2, 40], strides = [1, 1, 1]} : vector<2x8x40xf32> to vector<2x2x40xf32>
    %38 = vector.extract_strided_slice %36 {offsets = [0, 0, 0], sizes = [2, 6, 40], strides = [1, 1, 1]} : vector<2x8x40xf32> to vector<2x6x40xf32>
    %39 = tpu.concatenate %37, %38 in 1 : vector<2x2x40xf32>, vector<2x6x40xf32> -> vector<2x8x40xf32>
    %40 = vector.extract_strided_slice %35 {offsets = [0, 0, 0], sizes = [1, 8, 40], strides = [1, 1, 1]} : vector<3x8x40xf32> to vector<1x8x40xf32>
    %41 = vector.shape_cast %40 : vector<1x8x40xf32> to vector<8x40xf32>
    %42 = vector.shape_cast %41 : vector<8x40xf32> to vector<1x8x40xf32>
    %43 = vector.broadcast %42 : vector<1x8x40xf32> to vector<2x8x40xf32>
    %44 = arith.mulf %43, %39 : vector<2x8x40xf32>
    %45 = vector.extract_strided_slice %36 {offsets = [0, 7, 0], sizes = [2, 1, 40], strides = [1, 1, 1]} : vector<2x8x40xf32> to vector<2x1x40xf32>
    %46 = vector.extract_strided_slice %36 {offsets = [0, 0, 0], sizes = [2, 7, 40], strides = [1, 1, 1]} : vector<2x8x40xf32> to vector<2x7x40xf32>
    %47 = tpu.concatenate %45, %46 in 1 : vector<2x1x40xf32>, vector<2x7x40xf32> -> vector<2x8x40xf32>
    %48 = vector.extract_strided_slice %35 {offsets = [1, 0, 0], sizes = [1, 8, 40], strides = [1, 1, 1]} : vector<3x8x40xf32> to vector<1x8x40xf32>
    %49 = vector.shape_cast %48 : vector<1x8x40xf32> to vector<8x40xf32>
    %50 = vector.shape_cast %49 : vector<8x40xf32> to vector<1x8x40xf32>
    %51 = vector.broadcast %50 : vector<1x8x40xf32> to vector<2x8x40xf32>
    %52 = arith.mulf %51, %47 : vector<2x8x40xf32>
    %53 = vector.extract_strided_slice %35 {offsets = [2, 0, 0], sizes = [1, 8, 40], strides = [1, 1, 1]} : vector<3x8x40xf32> to vector<1x8x40xf32>
    %54 = vector.shape_cast %53 : vector<1x8x40xf32> to vector<8x40xf32>
    %55 = vector.shape_cast %54 : vector<8x40xf32> to vector<1x8x40xf32>
    %56 = vector.broadcast %55 : vector<1x8x40xf32> to vector<2x8x40xf32>
    %57 = arith.mulf %56, %36 : vector<2x8x40xf32>
    %58 = arith.addf %44, %52 : vector<2x8x40xf32>
    %59 = arith.addf %58, %57 : vector<2x8x40xf32>
    %c0_18 = arith.constant 0 : index
    %c0_19 = arith.constant 0 : index
    %c0_20 = arith.constant 0 : index
    %60 = vector.load %arg7[%c0_18, %c0_19, %c0_20] : memref<3x1x40xf32, #tpu.memory_space<vmem>>, vector<1x1x40xf32>
    %61 = vector.shape_cast %60 : vector<1x1x40xf32> to vector<1x40xf32>
    %62 = vector.shape_cast %61 : vector<1x40xf32> to vector<1x1x40xf32>
    %63 = vector.broadcast %62 : vector<1x1x40xf32> to vector<2x8x40xf32>
    %64 = arith.addf %59, %63 : vector<2x8x40xf32>
    %65 = vector.shape_cast %64 : vector<2x8x40xf32> to vector<16x40xf32>
    %c0_21 = arith.constant 0 : index
    %c0_22 = arith.constant 0 : index
    %c0_23 = arith.constant 0 : index
    %66 = vector.load %arg8[%c0_21, %c0_22, %c0_23] : memref<3x40x40xf32, #tpu.memory_space<vmem>>, vector<1x40x40xf32>
    %67 = vector.shape_cast %66 : vector<1x40x40xf32> to vector<40x40xf32>
    %cst_24 = arith.constant dense<0.000000e+00> : vector<16x40xf32>
    %68 = tpu.matmul %65, %67, %cst_24 {dimension_numbers = #tpu.dot_dimension_numbers<[1], [0], [0], [1], [0, 0, 1, 1], [], []>} : vector<16x40xf32>, vector<40x40xf32>, vector<16x40xf32> -> vector<16x40xf32>
    %69 = vector.shape_cast %68 : vector<16x40xf32> to vector<2x8x40xf32>
    %cst_25 = arith.constant dense<0.000000e+00> : vector<2x40xf32>
    %70 = vector.multi_reduction <add>, %69, %cst_25 [1] : vector<2x8x40xf32> to vector<2x40xf32>
    %71 = arith.mulf %69, %69 : vector<2x8x40xf32>
    %cst_26 = arith.constant dense<0.000000e+00> : vector<2x40xf32>
    %72 = vector.multi_reduction <add>, %71, %cst_26 [1] : vector<2x8x40xf32> to vector<2x40xf32>
    %73 = tpu.concatenate %70, %72 in 0 : vector<2x40xf32>, vector<2x40xf32> -> vector<4x40xf32>
    %c0_27 = arith.constant 0 : index
    %c0_28 = arith.constant 0 : index
    %74 = vector.load %arg9[%c0_27, %c0_28] : memref<40x8xf32, #tpu.memory_space<vmem>>, vector<40x8xf32>
    %cst_29 = arith.constant dense<0.000000e+00> : vector<4x8xf32>
    %75 = tpu.matmul %73, %74, %cst_29 {dimension_numbers = #tpu.dot_dimension_numbers<[1], [0], [0], [1], [0, 0, 1, 1], [], []>} : vector<4x40xf32>, vector<40x8xf32>, vector<4x8xf32> -> vector<4x8xf32>
    %76 = vector.extract_strided_slice %75 {offsets = [0, 0], sizes = [2, 8], strides = [1, 1]} : vector<4x8xf32> to vector<2x8xf32>
    %77 = vector.extract_strided_slice %75 {offsets = [2, 0], sizes = [2, 8], strides = [1, 1]} : vector<4x8xf32> to vector<2x8xf32>
    %78 = arith.mulf %76, %76 : vector<2x8xf32>
    %79 = arith.subf %77, %78 : vector<2x8xf32>
    %80 = tpu.concatenate %76, %79 in 0 : vector<2x8xf32>, vector<2x8xf32> -> vector<4x8xf32>
    %c0_30 = arith.constant 0 : index
    %c0_31 = arith.constant 0 : index
    %81 = vector.load %arg10[%c0_30, %c0_31] : memref<8x40xf32, #tpu.memory_space<vmem>>, vector<8x40xf32>
    %cst_32 = arith.constant dense<0.000000e+00> : vector<4x40xf32>
    %82 = tpu.matmul %80, %81, %cst_32 {dimension_numbers = #tpu.dot_dimension_numbers<[1], [0], [0], [1], [0, 0, 1, 1], [], []>} : vector<4x8xf32>, vector<8x40xf32>, vector<4x40xf32> -> vector<4x40xf32>
    %83 = vector.extract_strided_slice %82 {offsets = [0, 0], sizes = [2, 40], strides = [1, 1]} : vector<4x40xf32> to vector<2x40xf32>
    %84 = vector.extract_strided_slice %82 {offsets = [2, 0], sizes = [2, 40], strides = [1, 1]} : vector<4x40xf32> to vector<2x40xf32>
    %cst_33 = arith.constant 9.99999974E-6 : f32
    %85 = vector.broadcast %cst_33 : f32 to vector<2x40xf32>
    %86 = arith.addf %84, %85 : vector<2x40xf32>
    %87 = math.rsqrt %86 : vector<2x40xf32>
    %c0_34 = arith.constant 0 : index
    %c0_35 = arith.constant 0 : index
    %c0_36 = arith.constant 0 : index
    %88 = vector.load %arg11[%c0_34, %c0_35, %c0_36] : memref<3x1x40xf32, #tpu.memory_space<vmem>>, vector<1x1x40xf32>
    %89 = vector.shape_cast %88 : vector<1x1x40xf32> to vector<1x40xf32>
    %90 = vector.broadcast %89 : vector<1x40xf32> to vector<2x40xf32>
    %91 = arith.mulf %90, %87 : vector<2x40xf32>
    %c0_37 = arith.constant 0 : index
    %c0_38 = arith.constant 0 : index
    %c0_39 = arith.constant 0 : index
    %92 = vector.load %arg12[%c0_37, %c0_38, %c0_39] : memref<3x1x40xf32, #tpu.memory_space<vmem>>, vector<1x1x40xf32>
    %93 = vector.shape_cast %92 : vector<1x1x40xf32> to vector<1x40xf32>
    %94 = arith.mulf %83, %91 : vector<2x40xf32>
    %95 = vector.broadcast %93 : vector<1x40xf32> to vector<2x40xf32>
    %96 = arith.subf %95, %94 : vector<2x40xf32>
    %97 = vector.shape_cast %91 : vector<2x40xf32> to vector<2x1x40xf32>
    %98 = vector.broadcast %97 : vector<2x1x40xf32> to vector<2x8x40xf32>
    %99 = arith.mulf %69, %98 : vector<2x8x40xf32>
    %100 = vector.shape_cast %96 : vector<2x40xf32> to vector<2x1x40xf32>
    %101 = vector.broadcast %100 : vector<2x1x40xf32> to vector<2x8x40xf32>
    %102 = arith.addf %99, %101 : vector<2x8x40xf32>
    %cst_40 = arith.constant 2.000000e-01 : f32
    %103 = vector.broadcast %cst_40 : f32 to vector<2x8x40xf32>
    %104 = arith.mulf %103, %102 : vector<2x8x40xf32>
    %105 = arith.maximumf %102, %104 : vector<2x8x40xf32>
    %106 = vector.extract_strided_slice %0 {offsets = [0, 0, 0], sizes = [2, 8, 40], strides = [1, 1, 1]} : vector<2x8x160xf32> to vector<2x8x40xf32>
    %107 = arith.addf %105, %106 : vector<2x8x40xf32>
    %cst_41 = arith.constant 2.000000e-01 : f32
    %108 = vector.broadcast %cst_41 : f32 to vector<2x8x40xf32>
    %109 = arith.mulf %108, %107 : vector<2x8x40xf32>
    %110 = arith.maximumf %107, %109 : vector<2x8x40xf32>
    %111 = vector.extract_strided_slice %34 {offsets = [0, 0, 40], sizes = [2, 8, 40], strides = [1, 1, 1]} : vector<2x8x160xf32> to vector<2x8x40xf32>
    %112 = arith.addf %105, %111 : vector<2x8x40xf32>
    %113 = vector.extract_strided_slice %112 {offsets = [0, 6, 0], sizes = [2, 2, 40], strides = [1, 1, 1]} : vector<2x8x40xf32> to vector<2x2x40xf32>
    %114 = vector.extract_strided_slice %112 {offsets = [0, 0, 0], sizes = [2, 6, 40], strides = [1, 1, 1]} : vector<2x8x40xf32> to vector<2x6x40xf32>
    %115 = tpu.concatenate %113, %114 in 1 : vector<2x2x40xf32>, vector<2x6x40xf32> -> vector<2x8x40xf32>
    %116 = vector.extract_strided_slice %35 {offsets = [0, 0, 0], sizes = [1, 8, 40], strides = [1, 1, 1]} : vector<3x8x40xf32> to vector<1x8x40xf32>
    %117 = vector.shape_cast %116 : vector<1x8x40xf32> to vector<8x40xf32>
    %118 = vector.shape_cast %117 : vector<8x40xf32> to vector<1x8x40xf32>
    %119 = vector.broadcast %118 : vector<1x8x40xf32> to vector<2x8x40xf32>
    %120 = arith.mulf %119, %115 : vector<2x8x40xf32>
    %121 = vector.extract_strided_slice %112 {offsets = [0, 7, 0], sizes = [2, 1, 40], strides = [1, 1, 1]} : vector<2x8x40xf32> to vector<2x1x40xf32>
    %122 = vector.extract_strided_slice %112 {offsets = [0, 0, 0], sizes = [2, 7, 40], strides = [1, 1, 1]} : vector<2x8x40xf32> to vector<2x7x40xf32>
    %123 = tpu.concatenate %121, %122 in 1 : vector<2x1x40xf32>, vector<2x7x40xf32> -> vector<2x8x40xf32>
    %124 = vector.extract_strided_slice %35 {offsets = [1, 0, 0], sizes = [1, 8, 40], strides = [1, 1, 1]} : vector<3x8x40xf32> to vector<1x8x40xf32>
    %125 = vector.shape_cast %124 : vector<1x8x40xf32> to vector<8x40xf32>
    %126 = vector.shape_cast %125 : vector<8x40xf32> to vector<1x8x40xf32>
    %127 = vector.broadcast %126 : vector<1x8x40xf32> to vector<2x8x40xf32>
    %128 = arith.mulf %127, %123 : vector<2x8x40xf32>
    %129 = vector.extract_strided_slice %35 {offsets = [2, 0, 0], sizes = [1, 8, 40], strides = [1, 1, 1]} : vector<3x8x40xf32> to vector<1x8x40xf32>
    %130 = vector.shape_cast %129 : vector<1x8x40xf32> to vector<8x40xf32>
    %131 = vector.shape_cast %130 : vector<8x40xf32> to vector<1x8x40xf32>
    %132 = vector.broadcast %131 : vector<1x8x40xf32> to vector<2x8x40xf32>
    %133 = arith.mulf %132, %112 : vector<2x8x40xf32>
    %134 = arith.addf %120, %128 : vector<2x8x40xf32>
    %135 = arith.addf %134, %133 : vector<2x8x40xf32>
    %c1 = arith.constant 1 : index
    %c0_42 = arith.constant 0 : index
    %c0_43 = arith.constant 0 : index
    %136 = vector.load %arg7[%c1, %c0_42, %c0_43] : memref<3x1x40xf32, #tpu.memory_space<vmem>>, vector<1x1x40xf32>
    %137 = vector.shape_cast %136 : vector<1x1x40xf32> to vector<1x40xf32>
    %138 = vector.shape_cast %137 : vector<1x40xf32> to vector<1x1x40xf32>
    %139 = vector.broadcast %138 : vector<1x1x40xf32> to vector<2x8x40xf32>
    %140 = arith.addf %135, %139 : vector<2x8x40xf32>
    %141 = vector.shape_cast %140 : vector<2x8x40xf32> to vector<16x40xf32>
    %c1_44 = arith.constant 1 : index
    %c0_45 = arith.constant 0 : index
    %c0_46 = arith.constant 0 : index
    %142 = vector.load %arg8[%c1_44, %c0_45, %c0_46] : memref<3x40x40xf32, #tpu.memory_space<vmem>>, vector<1x40x40xf32>
    %143 = vector.shape_cast %142 : vector<1x40x40xf32> to vector<40x40xf32>
    %cst_47 = arith.constant dense<0.000000e+00> : vector<16x40xf32>
    %144 = tpu.matmul %141, %143, %cst_47 {dimension_numbers = #tpu.dot_dimension_numbers<[1], [0], [0], [1], [0, 0, 1, 1], [], []>} : vector<16x40xf32>, vector<40x40xf32>, vector<16x40xf32> -> vector<16x40xf32>
    %145 = vector.shape_cast %144 : vector<16x40xf32> to vector<2x8x40xf32>
    %cst_48 = arith.constant dense<0.000000e+00> : vector<2x40xf32>
    %146 = vector.multi_reduction <add>, %145, %cst_48 [1] : vector<2x8x40xf32> to vector<2x40xf32>
    %147 = arith.mulf %145, %145 : vector<2x8x40xf32>
    %cst_49 = arith.constant dense<0.000000e+00> : vector<2x40xf32>
    %148 = vector.multi_reduction <add>, %147, %cst_49 [1] : vector<2x8x40xf32> to vector<2x40xf32>
    %149 = tpu.concatenate %146, %148 in 0 : vector<2x40xf32>, vector<2x40xf32> -> vector<4x40xf32>
    %c0_50 = arith.constant 0 : index
    %c0_51 = arith.constant 0 : index
    %150 = vector.load %arg9[%c0_50, %c0_51] : memref<40x8xf32, #tpu.memory_space<vmem>>, vector<40x8xf32>
    %cst_52 = arith.constant dense<0.000000e+00> : vector<4x8xf32>
    %151 = tpu.matmul %149, %150, %cst_52 {dimension_numbers = #tpu.dot_dimension_numbers<[1], [0], [0], [1], [0, 0, 1, 1], [], []>} : vector<4x40xf32>, vector<40x8xf32>, vector<4x8xf32> -> vector<4x8xf32>
    %152 = vector.extract_strided_slice %151 {offsets = [0, 0], sizes = [2, 8], strides = [1, 1]} : vector<4x8xf32> to vector<2x8xf32>
    %153 = vector.extract_strided_slice %151 {offsets = [2, 0], sizes = [2, 8], strides = [1, 1]} : vector<4x8xf32> to vector<2x8xf32>
    %154 = arith.mulf %152, %152 : vector<2x8xf32>
    %155 = arith.subf %153, %154 : vector<2x8xf32>
    %156 = tpu.concatenate %152, %155 in 0 : vector<2x8xf32>, vector<2x8xf32> -> vector<4x8xf32>
    %c0_53 = arith.constant 0 : index
    %c0_54 = arith.constant 0 : index
    %157 = vector.load %arg10[%c0_53, %c0_54] : memref<8x40xf32, #tpu.memory_space<vmem>>, vector<8x40xf32>
    %cst_55 = arith.constant dense<0.000000e+00> : vector<4x40xf32>
    %158 = tpu.matmul %156, %157, %cst_55 {dimension_numbers = #tpu.dot_dimension_numbers<[1], [0], [0], [1], [0, 0, 1, 1], [], []>} : vector<4x8xf32>, vector<8x40xf32>, vector<4x40xf32> -> vector<4x40xf32>
    %159 = vector.extract_strided_slice %158 {offsets = [0, 0], sizes = [2, 40], strides = [1, 1]} : vector<4x40xf32> to vector<2x40xf32>
    %160 = vector.extract_strided_slice %158 {offsets = [2, 0], sizes = [2, 40], strides = [1, 1]} : vector<4x40xf32> to vector<2x40xf32>
    %cst_56 = arith.constant 9.99999974E-6 : f32
    %161 = vector.broadcast %cst_56 : f32 to vector<2x40xf32>
    %162 = arith.addf %160, %161 : vector<2x40xf32>
    %163 = math.rsqrt %162 : vector<2x40xf32>
    %c1_57 = arith.constant 1 : index
    %c0_58 = arith.constant 0 : index
    %c0_59 = arith.constant 0 : index
    %164 = vector.load %arg11[%c1_57, %c0_58, %c0_59] : memref<3x1x40xf32, #tpu.memory_space<vmem>>, vector<1x1x40xf32>
    %165 = vector.shape_cast %164 : vector<1x1x40xf32> to vector<1x40xf32>
    %166 = vector.broadcast %165 : vector<1x40xf32> to vector<2x40xf32>
    %167 = arith.mulf %166, %163 : vector<2x40xf32>
    %c1_60 = arith.constant 1 : index
    %c0_61 = arith.constant 0 : index
    %c0_62 = arith.constant 0 : index
    %168 = vector.load %arg12[%c1_60, %c0_61, %c0_62] : memref<3x1x40xf32, #tpu.memory_space<vmem>>, vector<1x1x40xf32>
    %169 = vector.shape_cast %168 : vector<1x1x40xf32> to vector<1x40xf32>
    %170 = arith.mulf %159, %167 : vector<2x40xf32>
    %171 = vector.broadcast %169 : vector<1x40xf32> to vector<2x40xf32>
    %172 = arith.subf %171, %170 : vector<2x40xf32>
    %173 = vector.shape_cast %167 : vector<2x40xf32> to vector<2x1x40xf32>
    %174 = vector.broadcast %173 : vector<2x1x40xf32> to vector<2x8x40xf32>
    %175 = arith.mulf %145, %174 : vector<2x8x40xf32>
    %176 = vector.shape_cast %172 : vector<2x40xf32> to vector<2x1x40xf32>
    %177 = vector.broadcast %176 : vector<2x1x40xf32> to vector<2x8x40xf32>
    %178 = arith.addf %175, %177 : vector<2x8x40xf32>
    %cst_63 = arith.constant 2.000000e-01 : f32
    %179 = vector.broadcast %cst_63 : f32 to vector<2x8x40xf32>
    %180 = arith.mulf %179, %178 : vector<2x8x40xf32>
    %181 = arith.maximumf %178, %180 : vector<2x8x40xf32>
    %182 = vector.extract_strided_slice %0 {offsets = [0, 0, 40], sizes = [2, 8, 40], strides = [1, 1, 1]} : vector<2x8x160xf32> to vector<2x8x40xf32>
    %183 = arith.addf %181, %182 : vector<2x8x40xf32>
    %cst_64 = arith.constant 2.000000e-01 : f32
    %184 = vector.broadcast %cst_64 : f32 to vector<2x8x40xf32>
    %185 = arith.mulf %184, %183 : vector<2x8x40xf32>
    %186 = arith.maximumf %183, %185 : vector<2x8x40xf32>
    %187 = vector.extract_strided_slice %34 {offsets = [0, 0, 80], sizes = [2, 8, 40], strides = [1, 1, 1]} : vector<2x8x160xf32> to vector<2x8x40xf32>
    %188 = arith.addf %181, %187 : vector<2x8x40xf32>
    %189 = vector.extract_strided_slice %188 {offsets = [0, 6, 0], sizes = [2, 2, 40], strides = [1, 1, 1]} : vector<2x8x40xf32> to vector<2x2x40xf32>
    %190 = vector.extract_strided_slice %188 {offsets = [0, 0, 0], sizes = [2, 6, 40], strides = [1, 1, 1]} : vector<2x8x40xf32> to vector<2x6x40xf32>
    %191 = tpu.concatenate %189, %190 in 1 : vector<2x2x40xf32>, vector<2x6x40xf32> -> vector<2x8x40xf32>
    %192 = vector.extract_strided_slice %35 {offsets = [0, 0, 0], sizes = [1, 8, 40], strides = [1, 1, 1]} : vector<3x8x40xf32> to vector<1x8x40xf32>
    %193 = vector.shape_cast %192 : vector<1x8x40xf32> to vector<8x40xf32>
    %194 = vector.shape_cast %193 : vector<8x40xf32> to vector<1x8x40xf32>
    %195 = vector.broadcast %194 : vector<1x8x40xf32> to vector<2x8x40xf32>
    %196 = arith.mulf %195, %191 : vector<2x8x40xf32>
    %197 = vector.extract_strided_slice %188 {offsets = [0, 7, 0], sizes = [2, 1, 40], strides = [1, 1, 1]} : vector<2x8x40xf32> to vector<2x1x40xf32>
    %198 = vector.extract_strided_slice %188 {offsets = [0, 0, 0], sizes = [2, 7, 40], strides = [1, 1, 1]} : vector<2x8x40xf32> to vector<2x7x40xf32>
    %199 = tpu.concatenate %197, %198 in 1 : vector<2x1x40xf32>, vector<2x7x40xf32> -> vector<2x8x40xf32>
    %200 = vector.extract_strided_slice %35 {offsets = [1, 0, 0], sizes = [1, 8, 40], strides = [1, 1, 1]} : vector<3x8x40xf32> to vector<1x8x40xf32>
    %201 = vector.shape_cast %200 : vector<1x8x40xf32> to vector<8x40xf32>
    %202 = vector.shape_cast %201 : vector<8x40xf32> to vector<1x8x40xf32>
    %203 = vector.broadcast %202 : vector<1x8x40xf32> to vector<2x8x40xf32>
    %204 = arith.mulf %203, %199 : vector<2x8x40xf32>
    %205 = vector.extract_strided_slice %35 {offsets = [2, 0, 0], sizes = [1, 8, 40], strides = [1, 1, 1]} : vector<3x8x40xf32> to vector<1x8x40xf32>
    %206 = vector.shape_cast %205 : vector<1x8x40xf32> to vector<8x40xf32>
    %207 = vector.shape_cast %206 : vector<8x40xf32> to vector<1x8x40xf32>
    %208 = vector.broadcast %207 : vector<1x8x40xf32> to vector<2x8x40xf32>
    %209 = arith.mulf %208, %188 : vector<2x8x40xf32>
    %210 = arith.addf %196, %204 : vector<2x8x40xf32>
    %211 = arith.addf %210, %209 : vector<2x8x40xf32>
    %c2 = arith.constant 2 : index
    %c0_65 = arith.constant 0 : index
    %c0_66 = arith.constant 0 : index
    %212 = vector.load %arg7[%c2, %c0_65, %c0_66] : memref<3x1x40xf32, #tpu.memory_space<vmem>>, vector<1x1x40xf32>
    %213 = vector.shape_cast %212 : vector<1x1x40xf32> to vector<1x40xf32>
    %214 = vector.shape_cast %213 : vector<1x40xf32> to vector<1x1x40xf32>
    %215 = vector.broadcast %214 : vector<1x1x40xf32> to vector<2x8x40xf32>
    %216 = arith.addf %211, %215 : vector<2x8x40xf32>
    %217 = vector.shape_cast %216 : vector<2x8x40xf32> to vector<16x40xf32>
    %c2_67 = arith.constant 2 : index
    %c0_68 = arith.constant 0 : index
    %c0_69 = arith.constant 0 : index
    %218 = vector.load %arg8[%c2_67, %c0_68, %c0_69] : memref<3x40x40xf32, #tpu.memory_space<vmem>>, vector<1x40x40xf32>
    %219 = vector.shape_cast %218 : vector<1x40x40xf32> to vector<40x40xf32>
    %cst_70 = arith.constant dense<0.000000e+00> : vector<16x40xf32>
    %220 = tpu.matmul %217, %219, %cst_70 {dimension_numbers = #tpu.dot_dimension_numbers<[1], [0], [0], [1], [0, 0, 1, 1], [], []>} : vector<16x40xf32>, vector<40x40xf32>, vector<16x40xf32> -> vector<16x40xf32>
    %221 = vector.shape_cast %220 : vector<16x40xf32> to vector<2x8x40xf32>
    %cst_71 = arith.constant dense<0.000000e+00> : vector<2x40xf32>
    %222 = vector.multi_reduction <add>, %221, %cst_71 [1] : vector<2x8x40xf32> to vector<2x40xf32>
    %223 = arith.mulf %221, %221 : vector<2x8x40xf32>
    %cst_72 = arith.constant dense<0.000000e+00> : vector<2x40xf32>
    %224 = vector.multi_reduction <add>, %223, %cst_72 [1] : vector<2x8x40xf32> to vector<2x40xf32>
    %225 = tpu.concatenate %222, %224 in 0 : vector<2x40xf32>, vector<2x40xf32> -> vector<4x40xf32>
    %c0_73 = arith.constant 0 : index
    %c0_74 = arith.constant 0 : index
    %226 = vector.load %arg9[%c0_73, %c0_74] : memref<40x8xf32, #tpu.memory_space<vmem>>, vector<40x8xf32>
    %cst_75 = arith.constant dense<0.000000e+00> : vector<4x8xf32>
    %227 = tpu.matmul %225, %226, %cst_75 {dimension_numbers = #tpu.dot_dimension_numbers<[1], [0], [0], [1], [0, 0, 1, 1], [], []>} : vector<4x40xf32>, vector<40x8xf32>, vector<4x8xf32> -> vector<4x8xf32>
    %228 = vector.extract_strided_slice %227 {offsets = [0, 0], sizes = [2, 8], strides = [1, 1]} : vector<4x8xf32> to vector<2x8xf32>
    %229 = vector.extract_strided_slice %227 {offsets = [2, 0], sizes = [2, 8], strides = [1, 1]} : vector<4x8xf32> to vector<2x8xf32>
    %230 = arith.mulf %228, %228 : vector<2x8xf32>
    %231 = arith.subf %229, %230 : vector<2x8xf32>
    %232 = tpu.concatenate %228, %231 in 0 : vector<2x8xf32>, vector<2x8xf32> -> vector<4x8xf32>
    %c0_76 = arith.constant 0 : index
    %c0_77 = arith.constant 0 : index
    %233 = vector.load %arg10[%c0_76, %c0_77] : memref<8x40xf32, #tpu.memory_space<vmem>>, vector<8x40xf32>
    %cst_78 = arith.constant dense<0.000000e+00> : vector<4x40xf32>
    %234 = tpu.matmul %232, %233, %cst_78 {dimension_numbers = #tpu.dot_dimension_numbers<[1], [0], [0], [1], [0, 0, 1, 1], [], []>} : vector<4x8xf32>, vector<8x40xf32>, vector<4x40xf32> -> vector<4x40xf32>
    %235 = vector.extract_strided_slice %234 {offsets = [0, 0], sizes = [2, 40], strides = [1, 1]} : vector<4x40xf32> to vector<2x40xf32>
    %236 = vector.extract_strided_slice %234 {offsets = [2, 0], sizes = [2, 40], strides = [1, 1]} : vector<4x40xf32> to vector<2x40xf32>
    %cst_79 = arith.constant 9.99999974E-6 : f32
    %237 = vector.broadcast %cst_79 : f32 to vector<2x40xf32>
    %238 = arith.addf %236, %237 : vector<2x40xf32>
    %239 = math.rsqrt %238 : vector<2x40xf32>
    %c2_80 = arith.constant 2 : index
    %c0_81 = arith.constant 0 : index
    %c0_82 = arith.constant 0 : index
    %240 = vector.load %arg11[%c2_80, %c0_81, %c0_82] : memref<3x1x40xf32, #tpu.memory_space<vmem>>, vector<1x1x40xf32>
    %241 = vector.shape_cast %240 : vector<1x1x40xf32> to vector<1x40xf32>
    %242 = vector.broadcast %241 : vector<1x40xf32> to vector<2x40xf32>
    %243 = arith.mulf %242, %239 : vector<2x40xf32>
    %c2_83 = arith.constant 2 : index
    %c0_84 = arith.constant 0 : index
    %c0_85 = arith.constant 0 : index
    %244 = vector.load %arg12[%c2_83, %c0_84, %c0_85] : memref<3x1x40xf32, #tpu.memory_space<vmem>>, vector<1x1x40xf32>
    %245 = vector.shape_cast %244 : vector<1x1x40xf32> to vector<1x40xf32>
    %246 = arith.mulf %235, %243 : vector<2x40xf32>
    %247 = vector.broadcast %245 : vector<1x40xf32> to vector<2x40xf32>
    %248 = arith.subf %247, %246 : vector<2x40xf32>
    %249 = vector.shape_cast %243 : vector<2x40xf32> to vector<2x1x40xf32>
    %250 = vector.broadcast %249 : vector<2x1x40xf32> to vector<2x8x40xf32>
    %251 = arith.mulf %221, %250 : vector<2x8x40xf32>
    %252 = vector.shape_cast %248 : vector<2x40xf32> to vector<2x1x40xf32>
    %253 = vector.broadcast %252 : vector<2x1x40xf32> to vector<2x8x40xf32>
    %254 = arith.addf %251, %253 : vector<2x8x40xf32>
    %cst_86 = arith.constant 2.000000e-01 : f32
    %255 = vector.broadcast %cst_86 : f32 to vector<2x8x40xf32>
    %256 = arith.mulf %255, %254 : vector<2x8x40xf32>
    %257 = arith.maximumf %254, %256 : vector<2x8x40xf32>
    %258 = vector.extract_strided_slice %0 {offsets = [0, 0, 80], sizes = [2, 8, 40], strides = [1, 1, 1]} : vector<2x8x160xf32> to vector<2x8x40xf32>
    %259 = arith.addf %257, %258 : vector<2x8x40xf32>
    %cst_87 = arith.constant 2.000000e-01 : f32
    %260 = vector.broadcast %cst_87 : f32 to vector<2x8x40xf32>
    %261 = arith.mulf %260, %259 : vector<2x8x40xf32>
    %262 = arith.maximumf %259, %261 : vector<2x8x40xf32>
    %263 = vector.extract_strided_slice %34 {offsets = [0, 0, 120], sizes = [2, 8, 40], strides = [1, 1, 1]} : vector<2x8x160xf32> to vector<2x8x40xf32>
    %264 = vector.extract_strided_slice %0 {offsets = [0, 0, 120], sizes = [2, 8, 40], strides = [1, 1, 1]} : vector<2x8x160xf32> to vector<2x8x40xf32>
    %265 = arith.addf %263, %264 : vector<2x8x40xf32>
    %cst_88 = arith.constant 2.000000e-01 : f32
    %266 = vector.broadcast %cst_88 : f32 to vector<2x8x40xf32>
    %267 = arith.mulf %266, %265 : vector<2x8x40xf32>
    %268 = arith.maximumf %265, %267 : vector<2x8x40xf32>
    %269 = tpu.concatenate %110, %186, %262, %268 in 2 : vector<2x8x40xf32>, vector<2x8x40xf32>, vector<2x8x40xf32>, vector<2x8x40xf32> -> vector<2x8x160xf32>
    %c0_89 = arith.constant 0 : index
    %c0_90 = arith.constant 0 : index
    %c0_91 = arith.constant 0 : index
    %270 = vector.load %arg13[%c0_89, %c0_90, %c0_91] : memref<2x8x160xf32, #tpu.memory_space<vmem>>, vector<2x8x160xf32>
    tpu.vector_store %arg13[%c0_89, %c0_90, %c0_91], %269 {strides = array<i32>} : memref<2x8x160xf32, #tpu.memory_space<vmem>>, vector<2x8x160xf32>,
    return
  }
  func.func @transform_0(%arg0: i32) -> (i32, i32, i32) {
    %c0_i32 = arith.constant 0 : i32
    %c0_i32_0 = arith.constant 0 : i32
    %c0_i32_1 = arith.constant 0 : i32
    %c0_i32_2 = arith.constant 0 : i32
    return %c0_i32, %c0_i32_0, %c0_i32_1 : i32, i32, i32
  }
  func.func @transform_1(%arg0: i32) -> (i32, i32) {
    %c0_i32 = arith.constant 0 : i32
    %c0_i32_0 = arith.constant 0 : i32
    %c0_i32_1 = arith.constant 0 : i32
    return %c0_i32, %c0_i32_0 : i32, i32
  }
  func.func @transform_2(%arg0: i32) -> (i32, i32) {
    %c0_i32 = arith.constant 0 : i32
    %c0_i32_0 = arith.constant 0 : i32
    %c0_i32_1 = arith.constant 0 : i32
    return %c0_i32, %c0_i32_0 : i32, i32
  }
  func.func @transform_3(%arg0: i32) -> (i32, i32) {
    %c0_i32 = arith.constant 0 : i32
    %c0_i32_0 = arith.constant 0 : i32
    %c0_i32_1 = arith.constant 0 : i32
    return %c0_i32, %c0_i32_0 : i32, i32
  }
  func.func @transform_4(%arg0: i32) -> (i32, i32) {
    %c0_i32 = arith.constant 0 : i32
    %c0_i32_0 = arith.constant 0 : i32
    %c0_i32_1 = arith.constant 0 : i32
    return %c0_i32, %c0_i32_0 : i32, i32
  }
  func.func @transform_5(%arg0: i32) -> (i32, i32, i32) {
    %c0_i32 = arith.constant 0 : i32
    %c0_i32_0 = arith.constant 0 : i32
    %c0_i32_1 = arith.constant 0 : i32
    %c0_i32_2 = arith.constant 0 : i32
    return %c0_i32, %c0_i32_0, %c0_i32_1 : i32, i32, i32
  }
  func.func @transform_6(%arg0: i32) -> (i32, i32, i32) {
    %c0_i32 = arith.constant 0 : i32
    %c0_i32_0 = arith.constant 0 : i32
    %c0_i32_1 = arith.constant 0 : i32
    %c0_i32_2 = arith.constant 0 : i32
    return %c0_i32, %c0_i32_0, %c0_i32_1 : i32, i32, i32
  }
  func.func @transform_7(%arg0: i32) -> (i32, i32, i32) {
    %c0_i32 = arith.constant 0 : i32
    %c0_i32_0 = arith.constant 0 : i32
    %c0_i32_1 = arith.constant 0 : i32
    %c0_i32_2 = arith.constant 0 : i32
    return %c0_i32, %c0_i32_0, %c0_i32_1 : i32, i32, i32
  }
  func.func @transform_8(%arg0: i32) -> (i32, i32) {
    %c0_i32 = arith.constant 0 : i32
    %c0_i32_0 = arith.constant 0 : i32
    %c0_i32_1 = arith.constant 0 : i32
    return %c0_i32, %c0_i32_0 : i32, i32
  }
  func.func @transform_9(%arg0: i32) -> (i32, i32) {
    %c0_i32 = arith.constant 0 : i32
    %c0_i32_0 = arith.constant 0 : i32
    %c0_i32_1 = arith.constant 0 : i32
    return %c0_i32, %c0_i32_0 : i32, i32
  }
  func.func @transform_10(%arg0: i32) -> (i32, i32, i32) {
    %c0_i32 = arith.constant 0 : i32
    %c0_i32_0 = arith.constant 0 : i32
    %c0_i32_1 = arith.constant 0 : i32
    %c0_i32_2 = arith.constant 0 : i32
    return %c0_i32, %c0_i32_0, %c0_i32_1 : i32, i32, i32
  }
  func.func @transform_11(%arg0: i32) -> (i32, i32, i32) {
    %c0_i32 = arith.constant 0 : i32
    %c0_i32_0 = arith.constant 0 : i32
    %c0_i32_1 = arith.constant 0 : i32
    %c0_i32_2 = arith.constant 0 : i32
    return %c0_i32, %c0_i32_0, %c0_i32_1 : i32, i32, i32
  }
  func.func @transform_12(%arg0: i32) -> (i32, i32, i32) {
    %c0_i32 = arith.constant 0 : i32
    %c0_i32_0 = arith.constant 0 : i32
    %c0_i32_1 = arith.constant 0 : i32
    %c0_i32_2 = arith.constant 0 : i32
    return %c0_i32, %c0_i32_0, %c0_i32_1 : i32, i32, i32
  }
}

</mosaic_0001>

<bundles_post_ra>
// kernel: d_block_apply_lane_dense.1
= control target key start
LH: loop header
LB: loop body
LE: loop exit
PB: predicated region body
PF: predicated region fallthrough
CT: control target
= control target key end

     0   :  { %v2100_v3 = vmov 0.0|0.0   ;;  %vm52_vm0 = vcmask 261120   ;;  %s2663_s0 = inlined_call_operand.vmem [shape: f32[2,8,160], index: 0, kind: input, shape index: {}]   ;;  %s2664_s1 = inlined_call_operand.vmem [shape: f32[1,160], index: 1, kind: input, shape index: {}]   ;;  %s2665_s2 = inlined_call_operand.vmem [shape: f32[1,160], index: 2, kind: input, shape index: {}]   ;;  %s2666_s3 = inlined_call_operand.vmem [shape: f32[160,32], index: 3, kind: input, shape index: {}]   ;;  %s2667_s4 = inlined_call_operand.vmem [shape: f32[32,160], index: 4, kind: input, shape index: {}]   ;;  %s2668_s5 = inlined_call_operand.vmem [shape: f32[3,8,40], index: 5, kind: input, shape index: {}]   ;;  %s2669_s6 = inlined_call_operand.vmem [shape: f32[3,1,40], index: 6, kind: input, shape index: {}]   ;;  %s2670_s7 = inlined_call_operand.vmem [shape: f32[3,40,40], index: 7, kind: input, shape index: {}]   ;;  %s2671_s8 = inlined_call_operand.vmem [shape: f32[40,8], index: 8, kind: input, shape index: {}]   ;;  %s2672_s9 = inlined_call_operand.vmem [shape: f32[8,40], index: 9, kind: input, shape index: {}]   ;;  %s2673_s10 = inlined_call_operand.vmem [shape: f32[3,1,40], index: 10, kind: input, shape index: {}]   ;;  %s2674_s11 = inlined_call_operand.vmem [shape: f32[3,1,40], index: 11, kind: input, shape index: {}]   ;;  %s2675_s12 = inlined_call_operand.hbm [shape: f32[2,8,160], index: 12, kind: output, shape index: {}]  }
   0x1   :  { %v124_v0 = vld [vmem:[%s2666_s3] sm:$0xff]  ;;  %v125_v1 = vld [vmem:[%s2666_s3 + $0x8] sm:$0xff]  ;;  %v126_v2 = vld [vmem:[%s2666_s3 + $0x10] sm:$0xff]  ;;  %1973 = vmatprep.subr.bf16.mxu0 %v2100_v3 }
   0x2   :  { %v1974_v4 = vpack.c.bf16 %v125_v1, %v124_v0  ;;  %v127_v5 = vld [vmem:[%s2666_s3 + $0x18] sm:$0xff]  ;;  %v128_v7 = vld [vmem:[%s2666_s3 + $0x20] sm:$0xff]  ;;  %v129_v8 = vld [vmem:[%s2666_s3 + $0x28] sm:$0xff] }
   0x3   :  { %v1977_v6 = vpack.c.bf16 %v127_v5, %v126_v2  ;;  %v130_v9 = vld [vmem:[%s2666_s3 + $0x30] sm:$0xff]  ;;  %v131_v10 = vld [vmem:[%s2666_s3 + $0x38] sm:$0xff]  ;;  %v2205_v11 = vld [vmem:[%s2663_s0 + $0x8] sm:$0xff]  ;;  %v1980_v12 = vpack.c.bf16 %v129_v8, %v128_v7 }
   0x4   :  { %1975 = vmatpush1.bf16.msra.mxu0 %v1974_v4  ;;  %v2210_v13 = vld [vmem:[%s2663_s0 + $0x18] sm:$0xff]  ;;  %v53_v14 = vsel %vm52_vm0, %v2205_v11, 0.0  ;;  %v74_v15 = vmul.f32 %v2205_v11, %v2205_v11  ;;  %v2219_v16 = vld [vmem:[%s2663_s0] sm:$0xff]  ;;  %v2229_v20 = vld [vmem:[%s2663_s0 + $0x10] sm:$0xff] }
   0x5   :  { %1976 = vmatprep.subr.bf16.mxu0 %v2100_v3  ;;  %v54_v17 = vrot.slane %v53_v14, 4  ;;  %v66_v18 = vsel %vm52_vm0, %v2210_v13, 0.0  ;;  %v76_v19 = vmul.f32 %v2210_v13, %v2210_v13 }
   0x8   :  { %1978 = vmatpush1.bf16.msra.mxu0 %v1977_v6 }
   0x9   :  { %1979 = vmatprep.subr.bf16.mxu0 %v2100_v3 }
   0xa   :  { %17 = vsyncpa [#allocation3], 0  ;;  %v1983_v21 = vpack.c.bf16 %v131_v10, %v130_v9  ;;  %v67_v22 = vrot.slane %v66_v18, 4  ;;  %v83_v23 = vsel %vm52_vm0, %v74_v15, 0.0  ;;  %v73_v24 = vmul.f32 %v2219_v16, %v2219_v16  ;;  %v132_v29 = vld [vmem:[%s2666_s3 + $0x40] sm:$0xff]  ;;  %v133_v30 = vld [vmem:[%s2666_s3 + $0x48] sm:$0xff] }
   0xb   :  { %v55_v25 = vadd.f32 %v54_v17, %v53_v14  ;;  %v84_v26 = vrot.slane %v83_v23, 4  ;;  %v96_v27 = vsel %vm52_vm0, %v76_v19, 0.0  ;;  %v46_v28 = vrot.slane %v2219_v16, 4  ;;  %v134_v48 = vld [vmem:[%s2666_s3 + $0x50] sm:$0xff]  ;;  %v135_v49 = vld [vmem:[%s2666_s3 + $0x58] sm:$0xff]  ;;  %v136_v62 = vld [vmem:[%s2666_s3 + $0x60] sm:$0xff] }
   0xc   :  { %1981 = vmatpush1.bf16.msra.mxu0 %v1980_v12  ;;  %v68_v31 = vadd.f32 %v67_v22, %v66_v18  ;;  %v97_v32 = vrot.slane %v96_v27, 4  ;;  %v60_v33 = vrot.slane %v2229_v20, 4  ;;  %v75_v34 = vmul.f32 %v2229_v20, %v2229_v20  ;;  %v137_v63 = vld [vmem:[%s2666_s3 + $0x68] sm:$0xff]  ;;  %v138_v10 = vld [vmem:[%s2666_s3 + $0x70] sm:$0xff]  ;;  %v139_v12 = vld [vmem:[%s2666_s3 + $0x78] sm:$0xff]  ;;  %s2103_s24 = smov 48  }
   0xd   :  { %1982 = vmatprep.subr.bf16.mxu0 %v2100_v3  ;;  %v56_v35 = vrot.slane %v55_v25, 2  ;;  %v85_v36 = vadd.f32 %v84_v26, %v83_v23  ;;  %v77_v37 = vrot.slane %v73_v24, 4  ;;  %v1986_v41 = vpack.c.bf16 %v133_v30, %v132_v29  ;;  %v141_v22 = vld [vmem:[%s2666_s3 + $0x88] sm:$0xff]  ;;  %v143_v29 = vld [vmem:[%s2666_s3 + $0x98] sm:$0xff]  ;;  %s2104_s25 = smov 88  }
   0xe   :  { %v69_v38 = vrot.slane %v68_v31, 2  ;;  %v98_v39 = vadd.f32 %v97_v32, %v96_v27  ;;  %v90_v40 = vrot.slane %v75_v34, 4  ;;  %v47_v46 = vadd.f32 %v46_v28, %v2219_v16  ;;  %v142_v28 = vld [vmem:[%s2666_s3 + $0x90] sm:$0xff] }
   0xf   :  { %v57_v42 = vadd.f32 %v56_v35, %v55_v25  ;;  %v86_v43 = vrot.slane %v85_v36, 2  ;;  %v61_v47 = vadd.f32 %v60_v33, %v2229_v20  ;;  %v78_v52 = vadd.f32 %v77_v37, %v73_v24 }
  0x10   :  { %1984 = vmatpush1.bf16.msra.mxu0 %v1983_v21  ;;  %v70_v44 = vadd.f32 %v69_v38, %v68_v31  ;;  %v99_v45 = vrot.slane %v98_v39, 2  ;;  %v91_v53 = vadd.f32 %v90_v40, %v75_v34  ;;  %vm107_vm1 = vcmask 1041409   ;;  %v140_v21 = vld [vmem:[%s2666_s3 + $0x80] sm:$0xff]  ;;  %v224_v38 = vld [vmem:[%s2667_s4 + $0x8] sm:$0xff] }
  0x11   :  { %1985 = vmatprep.subr.bf16.mxu0 %v2100_v3  ;;  %v58_v50 = vrot.slane %v57_v42, 1  ;;  %v87_v51 = vadd.f32 %v86_v43, %v85_v36  ;;  %vm116_vm2 = vcmask 1043459   ;;  %v1989_v58 = vpack.c.bf16 %v135_v49, %v134_v48  ;;  %v229_v48 = vld [vmem:[%s2667_s4 + $0x30] sm:$0xff] }
  0x12   :  { %v71_v54 = vrot.slane %v70_v44, 1  ;;  %v100_v55 = vadd.f32 %v99_v45, %v98_v39  ;;  %v48_v61 = vrot.slane %v47_v46, 2  ;;  %v62_v1 = vrot.slane %v61_v47, 2  ;;  %v226_v39 = vld [vmem:[%s2667_s4 + $0x18] sm:$0xff] }
  0x13   :  { %v59_v56 = vadd.f32 %v58_v50, %v57_v42  ;;  %v88_v57 = vrot.slane %v87_v51, 1  ;;  %v79_v2 = vrot.slane %v78_v52, 2  ;;  %v92_v4 = vrot.slane %v91_v53, 2  ;;  %v225_v42 = vld [vmem:[%s2667_s4 + $0x10] sm:$0xff]  ;;  %v230_v45 = vld [vmem:[%s2667_s4 + $0x38] sm:$0xff] }
  0x14   :  { %1987 = vmatpush1.bf16.msra.mxu0 %v1986_v41  ;;  %v72_v59 = vadd.f32 %v71_v54, %v70_v44  ;;  %v101_v60 = vrot.slane %v100_v55, 1  ;;  %vm121_vm3 = vcmask 1041408   ;;  %v1992_v7 = vpack.c.bf16 %v137_v63, %v136_v62  ;;  %v223_v41 = vld [vmem:[%s2667_s4] sm:$0xff]  ;;  %v228_v44 = vld [vmem:[%s2667_s4 + $0x28] sm:$0xff] }
  0x15   :  { %1988 = vmatprep.subr.bf16.mxu0 %v2100_v3  ;;  %v89_v0 = vadd.f32 %v88_v57, %v87_v51  ;;  %v49_v9 = vadd.f32 %v48_v61, %v47_v46  ;;  %v63_v15 = vadd.f32 %v62_v1, %v61_v47  ;;  %v80_v17 = vadd.f32 %v79_v2, %v78_v52  ;;  %v227_v47 = vld [vmem:[%s2667_s4 + $0x20] sm:$0xff]  ;;  %v491_v61 = vld [vmem:[%s2670_s7 + $0x18] sm:$0xff] }
  0x16   :  { %v102_v5 = vadd.f32 %v101_v60, %v100_v55  ;;  %v109_v6 = vsel %vm107_vm1, %v72_v59, %v59_v56  ;;  %v93_v18 = vadd.f32 %v92_v4, %v91_v53  ;;  %v1995_v19 = vpack.c.bf16 %v139_v12, %v138_v10  ;;  %v488_v57 = vld [vmem:[%s2670_s7] sm:$0xff]  ;;  %v490_v60 = vld [vmem:[%s2670_s7 + $0x10] sm:$0xff] }
  0x17   :  { %v50_v23 = vrot.slane %v49_v9, 1  ;;  %v64_v24 = vrot.slane %v63_v15, 1  ;;  %v81_v25 = vrot.slane %v80_v17, 1  ;;  %v1998_v27 = vpack.c.bf16 %v141_v22, %v140_v21  ;;  %v492_v63 = vld [vmem:[%s2670_s7 + $0x20] sm:$0xff] }
  0x18   :  { %1990 = vmatpush1.bf16.msra.mxu0 %v1989_v58  ;;  %v118_v8 = vsel %vm116_vm2, %v102_v5, %v89_v0  ;;  %v94_v26 = vrot.slane %v93_v18, 1  ;;  %v2001_v34 = vpack.c.bf16 %v143_v29, %v142_v28  ;;  %v2003_v40 = vpack.c.bf16 %v226_v39, %v224_v38  ;;  %v489_v58 = vld [vmem:[%s2670_s7 + $0x8] sm:$0xff] }
  0x19   :  { %1991 = vmatprep.subr.bf16.mxu0 %v2100_v3  ;;  %v123_v14 = vsel %vm121_vm3, %v109_v6, %v118_v8  ;;  %v51_v30 = vadd.f32 %v50_v23, %v49_v9  ;;  %v65_v31 = vadd.f32 %v64_v24, %v63_v15  ;;  %v82_v32 = vadd.f32 %v81_v25, %v80_v17  ;;  %v309_v8 = vld [vmem:[%s2664_s1] sm:$0x3] }
  0x1a   :  { %1796 = vmatprep.mubr.msk.f32.mxu0 %vm52_vm0, %v123_v14  ;;  %v95_v33 = vadd.f32 %v94_v26, %v93_v18  ;;  %v2005_v43 = vpack.c.bf16 %v225_v42, %v223_v41  ;;  %2004 = vmatprep.subr.bf16.mxu1 %v2003_v40  ;;  %v2007_v46 = vpack.c.bf16 %v230_v45, %v228_v44  ;;  %v2101_v50 = vmov 0.0  }
  0x1b   :  { %v108_v35 = vsel %vm107_vm1, %v65_v31, %v51_v30  ;;  %v2009_v49 = vpack.c.bf16 %v229_v48, %v227_v47  ;;  %298 = vmatprep.mubr.f32.mxu1 %v2101_v50  ;;  %v2011_v59 = vpack.c.bf16 %v489_v58, %v488_v57  ;;  %v2015_v62 = vpack.c.bf16 %v491_v61, %v490_v60 }
  0x1c   :  { %1993 = vmatpush1.bf16.msra.mxu0 %v1992_v7  ;;  %v117_v36 = vsel %vm116_vm2, %v95_v33, %v82_v32  ;;  %2006 = vmatpush1.bf16.msra.mxu1 %v2005_v43  ;;  %v311_v0 = vlaneseq  ;;  %v2102_v9 = vmov 1966171168   ;;  %vm493_vm4 = vcmask 326656  }
  0x1d   :  { %1994 = vmatprep.subr.bf16.mxu0 %v2100_v3  ;;  %v122_v37 = vsel %vm121_vm3, %v108_v35, %v117_v36  ;;  %2008 = vmatprep.subr.bf16.mxu1 %v2007_v46  ;;  %v347_v10 = vunpack.c.l.s4 %v2102_v9  ;;  %vm2105_vm5 = vmmov 0   ;;  %vm699_vm6 = vcmask 64512  }
  0x1e   :  { %v312_v5 = vshrl.u32 %v311_v0, 7  ;;  %vm1770_vm7 = vcmask 654336   ;;  %vm1773_vm8 = vcmask 982016  }
  0x1f   :  { %v348_v15 = vunpack.c.0.s8 %v347_v10  ;;  %v2377_v10 = vld [vmem:[%s2668_s5 + $0x8] sm:$0xff] }
  0x20   :  { %1996 = vmatpush1.bf16.msra.mxu0 %v1995_v19  ;;  %2010 = vmatpush1.bf16.msra.mxu1 %v2009_v49  ;;  %v2335_v7 = vsub.s32 0, %v312_v5  ;;  %v317_v12 = vsub.s32 1, %v312_v5  ;;  %v323_v19 = vld [vmem:[%s2665_s2] sm:$0x3] }
  0x21   :  { %1997 = vmatprep.subr.bf16.mxu0 %v2100_v3  ;;  %2012 = vmatprep.subr.bf16.mxu1 %v2011_v59  ;;  %v2344_v23 = vsub.s32 %v348_v15, %v312_v5  ;;  %v2366_v5 = vld [vmem:[%s2668_s5] sm:$0xff] }
  0x22   :  { %v314_v14 = vrot.slane %v309_v8, %v2335_v7  ;;  %v318_v17 = vrot.slane %v309_v8, %v317_v12  ;;  %v336_v26 = vrot.slane %v323_v19, %v2335_v7  ;;  %v340_v28 = vrot.slane %v323_v19, %v317_v12 }
  0x24   :  { %1999 = vmatpush1.bf16.msra.mxu0 %v1998_v27 }
  0x25   :  { %2000 = vmatprep.subr.bf16.mxu0 %v2100_v3 }
  0x28   :  { %2002 = vmatpush1.bf16.msra.mxu0 %v2001_v34 }
  0x29   :  { %2033 = vmatprep.subr.bf16.mxu0 %v2100_v3 }
  0x2b   :  { %212 = vmatmul.mubr.f32.vlgmr.msra.gmra.mrb[0].mxu0 %v122_v37 }
  0x2c   :  { %1934 = vmatprep.mubr.msk.f32.mxu0 %vm2105_vm5, %v2101_v50 }
  0xfe   :  { %v213_v51 = vpop.f32.mrb[0].mxu0 }
  0xff   :  { %v217_v52 = vmul.f32 %v213_v51, %v213_v51  ;;  %v215_v53 = vpop.f32.mrb[1].mxu0 }
 0x101   :  { %v219_v54 = vrot.slane %v217_v52, 6 }
 0x103   :  { %v221_v55 = vsub.f32 %v213_v51, %v219_v54 }
 0x105   :  { %v222_v56 = vsel %vm121_vm3, %v213_v51, %v221_v55 }
 0x106   :  { %1797 = vmatmul.mubr.msk.f32.vlgmr.msra.gmra.mrb[0].mxu1 %vm52_vm0, %v222_v56 }
 0x107   :  { %2014 = vmatpush3.bf16.msra.mxu1 %v2011_v59 }
 0x108   :  { %2016 = vmatprep.subr.bf16.mxu1 %v2015_v62 }
 0x10b   :  { %2018 = vmatpush3.bf16.msra.mxu1 %v2015_v62 }
 0x10c   :  { %1888 = vmatprep.subr.mxu1 %v492_v63 }
 0x10f   :  { %1889 = vmatpush3.msra.mxu1 %v492_v63 }
 0x110   :  { %2019 = vmatprep.subr.bf16.mxu1 %v2100_v3 }
 0x1d9   :  { %v300_v1 = vpop.f32.mrb[0].mxu1 }
 0x1da   :  { %v305_v2 = vadd.f32 1e-05, %v300_v1  ;;  %v302_v4 = vpop.f32.mrb[1].mxu1 }
 0x1db   :  { %v306_v6 = vadd.f32 1e-05, %v302_v4 }
 0x1dc   :  { %2064 = vrsqrt.f32 %v305_v2 }
 0x1dd   :  { %2066 = vrsqrt.f32 %v306_v6 }
 0x1e6   :  { %v2065_v18 = vpop.eup %2064 }
 0x1e7   :  { %v2067_v21 = vpop.eup %2066  ;;  %v321_v22 = vmul.f32 %v2065_v18, %v314_v14 }
 0x1e8   :  { %v322_v24 = vmul.f32 %v2067_v21, %v318_v17 }
 0x1e9   :  { %v326_v25 = vrot.slane %v321_v22, 2 }
 0x1ea   :  { %v327_v27 = vrot.slane %v322_v24, 2  ;;  %v345_v29 = vcombine.low %v321_v22, %v322_v24 }
 0x1eb   :  { %v330_v30 = vmul.f32 %v326_v25, %v300_v1 }
 0x1ec   :  { %v331_v31 = vmul.f32 %v327_v27, %v302_v4  ;;  %v352_v32 = vrot.slane %v345_v29, %v2344_v23 }
 0x1ed   :  { %v343_v33 = vsub.f32 %v336_v26, %v330_v30 }
 0x1ee   :  { %v344_v34 = vsub.f32 %v340_v28, %v331_v31  ;;  %v353_v35 = vcombine.high %v352_v32, %v352_v32  ;;  %v360_v36 = vrot.slane %v352_v32, %v2344_v23 }
 0x1f0   :  { %v367_v37 = vrot.slane %v353_v35, %v2344_v23  ;;  %v368_v38 = vcombine.high %v360_v36, %v360_v36  ;;  %v396_v39 = vcombine.low %v343_v33, %v344_v34 }
 0x1f2   :  { %v369_v40 = vcombine.high %v367_v37, %v367_v37  ;;  %v373_v41 = vrot.slane %v368_v38, %v2335_v7  ;;  %v403_v42 = vrot.slane %v396_v39, %v2344_v23  ;;  %v377_v43 = vrot.slane %v368_v38, %v317_v12  ;;  %v614_v37 = vld [vmem:[%s2671_s8] sm:$0xff]  ;;  %v615_v38 = vld [vmem:[%s2671_s8 + $0x8] sm:$0xff] }
 0x1f3   :  { %v2419_v39 = vpack.c.bf16 %v615_v38, %v614_v37  ;;  %v1811_v37 = vld [vmem:[%s2670_s7 + $0x48] sm:$0xff] }
 0x1f4   :  { %v381_v44 = vrot.slane %v369_v40, %v2335_v7  ;;  %v385_v45 = vrot.slane %v369_v40, %v317_v12  ;;  %v404_v46 = vcombine.high %v403_v42, %v403_v42  ;;  %v411_v47 = vrot.slane %v403_v42, %v2344_v23 }
 0x1f5   :  { %v390_v48 = vmul.f32 %v373_v41, %v2219_v16  ;;  %v391_v49 = vmul.f32 %v377_v43, %v2205_v11  ;;  %2035 = vmatpush3.bf16.msra.mxu0 %v2419_v39  ;;  %v2439_v41 = vld [vmem:[%s2671_s8 + $0x20] sm:$0xff] }
 0x1f6   :  { %v418_v51 = vrot.slane %v404_v46, %v2344_v23  ;;  %v422_v52 = vrot.slane %v411_v47, %v2335_v7  ;;  %v426_v53 = vrot.slane %v411_v47, %v317_v12  ;;  %v392_v54 = vmul.f32 %v381_v44, %v2229_v20  ;;  %2036 = vmatprep.subr.bf16.mxu0 %v2100_v3 }
 0x1f7   :  { %v393_v55 = vmul.f32 %v385_v45, %v2210_v13 }
 0x1f8   :  { %v430_v56 = vrot.slane %v418_v51, %v2335_v7  ;;  %v434_v57 = vrot.slane %v418_v51, %v317_v12  ;;  %v439_v58 = vadd.f32 %v422_v52, %v390_v48  ;;  %v440_v59 = vadd.f32 %v426_v53, %v391_v49 }
 0x1fa   :  { %v441_v60 = vadd.f32 %v430_v56, %v392_v54  ;;  %v442_v61 = vadd.f32 %v434_v57, %v393_v55  ;;  %v443_v62 = vmul.f32 0.2, %v439_v58  ;;  %v444_v63 = vmul.f32 0.2, %v440_v59 }
 0x1fc   :  { %v445_v0 = vmul.f32 0.2, %v441_v60  ;;  %v446_v1 = vmul.f32 0.2, %v442_v61  ;;  %v2361_v2 = vmax.f32 %v439_v58, %v443_v62  ;;  %v448_v4 = vmax.f32 %v440_v59, %v444_v63 }
 0x1fe   :  { %v450_v6 = vmax.f32 %v442_v61, %v446_v1  ;;  %v1741_v8 = vadd.f32 %v448_v4, %v2205_v11  ;;  %1309 = vrot.lane.b32.xlu1 %v2361_v2, %s2103_s24  ;;  %876 = vrot.lane.b32.xlu0 %v2361_v2, %s2104_s25  ;;  %v2372_v9 = vmax.f32 %v441_v60, %v445_v0  ;;  %v456_v12 = vrot.slane %v2361_v2, 6  ;;  %v2384_v11 = vld [vmem:[%s2668_s5 + $0x10] sm:$0xff] }
 0x1ff   :  { %v464_v14 = vrot.slane %v2361_v2, 7  ;;  %v473_v26 = vmul.f32 %v2384_v11, %v2361_v2 }
 0x200   :  { %v457_v15 = vrot.slane %v2372_v9, 6  ;;  %v462_v17 = vmul.f32 %v456_v12, %v2366_v5  ;;  %v465_v18 = vrot.slane %v2372_v9, 7  ;;  %v1743_v21 = vadd.f32 %v450_v6, %v2210_v13  ;;  %v1798_v13 = vld [vmem:[%s2669_s6] ss:$0 sm:$0xff] }
 0x201   :  { %v471_v19 = vmul.f32 %v464_v14, %v2377_v10  ;;  %v1745_v25 = vmul.f32 0.2, %v1741_v8  ;;  %v474_v29 = vmul.f32 %v2384_v11, %v2372_v9 }
 0x202   :  { %1311 = vrot.lane.b32.xlu1 %v2372_v9, %s2103_s24  ;;  %878 = vrot.lane.b32.xlu0 %v2372_v9, %s2104_s25  ;;  %v463_v22 = vmul.f32 %v457_v15, %v2366_v5  ;;  %v472_v24 = vmul.f32 %v465_v18, %v2377_v10  ;;  %v1747_v28 = vmul.f32 0.2, %v1743_v21 }
 0x203   :  { %v475_v27 = vadd.f32 %v471_v19, %v462_v17  ;;  %v1749_v31 = vmax.f32 %v1741_v8, %v1745_v25  ;;  %v2473_v25 = vld [vmem:[%s2672_s9] sm:$0xff] }
 0x204   :  { %v476_v30 = vadd.f32 %v472_v24, %v463_v22  ;;  %v1751_v33 = vmax.f32 %v1743_v21, %v1747_v28 }
 0x205   :  { %v477_v32 = vadd.f32 %v475_v27, %v473_v26  ;;  %1777 = vst.msk [vmem:[#allocation2 + $0x8] sm:$0xff] %vm52_vm0, %v1749_v31  ;;  %v1807_v31 = vld [vmem:[%s2670_s7 + $0x28] sm:$0xff] }
 0x206   :  { %v478_v34 = vadd.f32 %v476_v30, %v474_v29  ;;  %1297 = vrot.lane.b32.xlu0 %v2219_v16, %s2104_s25  ;;  %1299 = vrot.lane.b32.xlu1 %v2229_v20, %s2104_s25  ;;  %1779 = vst.msk [vmem:[#allocation2 + $0x18] sm:$0xff] %vm52_vm0, %v1751_v33  ;;  %v1809_v33 = vld [vmem:[%s2670_s7 + $0x38] sm:$0xff] }
 0x207   :  { %v486_v35 = vadd.f32 %v1798_v13, %v477_v32  ;;  %v1808_v32 = vld [vmem:[%s2670_s7 + $0x30] sm:$0xff] }
 0x208   :  { %v487_v36 = vadd.f32 %v1798_v13, %v478_v34  ;;  %v2025_v34 = vpack.c.bf16 %v1808_v32, %v1807_v31 }
 0x209   :  { %1890 = vmatprep.mubr.msk.f32.mxu1 %vm493_vm4, %v486_v35  ;;  %v1810_v35 = vld [vmem:[%s2670_s7 + $0x40] sm:$0xff] }
 0x20a   :  { %1891 = vmatmul.mubr.msk.f32.vlgmr.msra.gmra.mrb[2].mxu1 %vm493_vm4, %v487_v36  ;;  %1728 = vrot.lane.b32.xlu0 %v2219_v16, %s2103_s24  ;;  %v616_v16 = vld [vmem:[%s2671_s8 + $0x10] sm:$0xff]  ;;  %v2029_v36 = vpack.c.bf16 %v1810_v35, %v1809_v33  ;;  %v1806_v33 = vld [vmem:[%s2669_s6 + $0x1] ss:$0 sm:$0xff] }
 0x20b   :  { %1730 = vrot.lane.b32.xlu1 %v2229_v20, %s2103_s24  ;;  %2021 = vmatpush3.bf16.msra.mxu1 %v2419_v39  ;;  %v617_v20 = vld [vmem:[%s2671_s8 + $0x18] sm:$0xff] }
 0x20c   :  { %2022 = vmatprep.subr.bf16.mxu1 %v2100_v3  ;;  %v2431_v40 = vpack.c.bf16 %v617_v20, %v616_v16  ;;  %1903 = vmatprep.mubr.msk.f32.mxu1 %vm2105_vm5, %v2101_v50 }
 0x20e   :  { %2038 = vmatpush3.bf16.msra.mxu0 %v2431_v40 }
 0x20f   :  { %2024 = vmatpush3.bf16.msra.mxu1 %v2431_v40  ;;  %1932 = vmatprep.subr.mxu0 %v2101_v50 }
 0x210   :  { %1901 = vmatprep.subr.mxu1 %v2101_v50 }
 0x212   :  { %1933 = vmatpush3.msra.mxu0 %v2439_v41 }
 0x213   :  { %1902 = vmatpush3.msra.mxu1 %v2439_v41  ;;  %2047 = vmatprep.subr.bf16.mxu0 %v2100_v3 }
 0x214   :  { %1906 = vmatprep.subr.mxu1 %v2101_v50 }
 0x2dd   :  { %v2450_v42 = vpop.f32.mrb[2].mxu1 }
 0x2de   :  { %v582_v43 = vsel %vm493_vm4, %v2450_v42, 0.0  ;;  %v590_v44 = vmul.f32 %v2450_v42, %v2450_v42  ;;  %v2456_v45 = vpop.f32.mrb[3].mxu1 }
 0x2df   :  { %v583_v46 = vrot.slane %v582_v43, 4  ;;  %v575_v47 = vsel %vm493_vm4, %v2456_v45, 0.0  ;;  %v589_v48 = vmul.f32 %v2456_v45, %v2456_v45 }
 0x2e0   :  { %v598_v49 = vsel %vm493_vm4, %v590_v44, 0.0  ;;  %v576_v51 = vrot.slane %v575_v47, 4 }
 0x2e1   :  { %v584_v52 = vadd.f32 %v583_v46, %v582_v43  ;;  %v599_v53 = vrot.slane %v598_v49, 4  ;;  %v591_v54 = vsel %vm493_vm4, %v589_v48, 0.0  ;;  %v1803_v43 = vld [vmem:[%s2673_s10] ss:$0 sm:$0xff] }
 0x2e2   :  { %v577_v55 = vadd.f32 %v576_v51, %v575_v47  ;;  %v592_v56 = vrot.slane %v591_v54, 4 }
 0x2e3   :  { %v585_v57 = vrot.slane %v584_v52, 2  ;;  %v600_v58 = vadd.f32 %v599_v53, %v598_v49  ;;  %v1804_v49 = vld [vmem:[%s2674_s11] ss:$0 sm:$0xff] }
 0x2e4   :  { %v578_v59 = vrot.slane %v577_v55, 2  ;;  %v593_v60 = vadd.f32 %v592_v56, %v591_v54 }
 0x2e5   :  { %v586_v61 = vadd.f32 %v585_v57, %v584_v52  ;;  %v601_v62 = vrot.slane %v600_v58, 2 }
 0x2e6   :  { %v579_v63 = vadd.f32 %v578_v59, %v577_v55  ;;  %v594_v0 = vrot.slane %v593_v60, 2 }
 0x2e7   :  { %v587_v1 = vrot.slane %v586_v61, 1  ;;  %v602_v4 = vadd.f32 %v601_v62, %v600_v58 }
 0x2e8   :  { %v580_v6 = vrot.slane %v579_v63, 1  ;;  %v595_v8 = vadd.f32 %v594_v0, %v593_v60 }
 0x2e9   :  { %v588_v12 = vadd.f32 %v587_v1, %v586_v61  ;;  %v603_v14 = vrot.slane %v602_v4, 1 }
 0x2ea   :  { %v581_v15 = vadd.f32 %v580_v6, %v579_v63  ;;  %v596_v17 = vrot.slane %v595_v8, 1 }
 0x2eb   :  { %v604_v18 = vadd.f32 %v603_v14, %v602_v4 }
 0x2ec   :  { %v597_v19 = vadd.f32 %v596_v17, %v595_v8  ;;  %v607_v21 = vsel %vm107_vm1, %v588_v12, %v581_v15  ;;  %v877_v12 = vpop.permute.xlu0 %876 }
 0x2ee   :  { %v611_v22 = vsel %vm116_vm2, %v604_v18, %v597_v19 }
 0x2ef   :  { %v613_v24 = vsel %vm121_vm3, %v607_v21, %v611_v22 }
 0x2f0   :  { %1904 = vmatmul.mubr.msk.f32.vlgmr.msra.gmra.mrb[4].mxu1 %vm493_vm4, %v613_v24  ;;  %v879_v21 = vpop.permute.xlu0 %878 }
 0x2f1   :  { %1908 = vmatprep.mubr.msk.f32.mxu1 %vm2105_vm5, %v2101_v50  ;;  %1907 = vmatpush3.msra.mxu1 %v2473_v25 }
 0x2f2   :  { %2026 = vmatprep.subr.bf16.mxu1 %v2025_v34 }
 0x3c3   :  { %v688_v26 = vpop.f32.mrb[4].mxu1 }
 0x3c4   :  { %v692_v27 = vmul.f32 %v688_v26, %v688_v26  ;;  %v1905_v28 = vpop.f32.mrb[5].mxu1 }
 0x3c6   :  { %v694_v29 = vrot.slane %v692_v27, 6 }
 0x3c8   :  { %v696_v30 = vsub.f32 %v688_v26, %v694_v29 }
 0x3ca   :  { %v697_v13 = vsel %vm121_vm3, %v688_v26, %v696_v30 }
 0x3cb   :  { %1909 = vmatmul.mubr.msk.f32.vlgmr.msra.gmra.mrb[6].mxu1 %vm699_vm6, %v697_v13 }
 0x3cc   :  { %2028 = vmatpush3.bf16.msra.mxu1 %v2025_v34 }
 0x3cd   :  { %2030 = vmatprep.subr.bf16.mxu1 %v2029_v36 }
 0x3d0   :  { %2032 = vmatpush3.bf16.msra.mxu1 %v2029_v36 }
 0x3d1   :  { %1919 = vmatprep.subr.mxu1 %v1811_v37 }
 0x3d4   :  { %1920 = vmatpush3.msra.mxu1 %v1811_v37 }
 0x3d5   :  { %1937 = vmatprep.subr.mxu1 %v2101_v50 }
 0x49e   :  { %v769_v38 = vpop.f32.mrb[6].mxu1 }
 0x49f   :  { %v773_v16 = vadd.f32 1e-05, %v769_v38  ;;  %v1910_v20 = vpop.f32.mrb[7].mxu1 }
 0x4a1   :  { %2068 = vrsqrt.f32 %v773_v16 }
 0x4ab   :  { %v2069_v44 = vpop.eup %2068 }
 0x4ac   :  { %v782_v46 = vmul.f32 %v2069_v44, %v1803_v43 }
 0x4ae   :  { %v785_v47 = vrot.slane %v782_v46, 2  ;;  %v801_v48 = vrot.slane %v782_v46, %v2344_v23 }
 0x4b0   :  { %v787_v51 = vmul.f32 %v785_v47, %v769_v38  ;;  %v802_v52 = vcombine.high %v801_v48, %v801_v48  ;;  %v809_v53 = vrot.slane %v801_v48, %v2344_v23 }
 0x4b2   :  { %v794_v54 = vsub.f32 %v1804_v49, %v787_v51  ;;  %v816_v55 = vrot.slane %v802_v52, %v2344_v23  ;;  %v817_v56 = vcombine.high %v809_v53, %v809_v53 }
 0x4b4   :  { %v818_v57 = vcombine.high %v816_v55, %v816_v55  ;;  %v822_v58 = vrot.slane %v817_v56, %v2335_v7  ;;  %v838_v59 = vrot.slane %v794_v54, %v2344_v23 }
 0x4b6   :  { %v826_v60 = vrot.slane %v818_v57, %v2335_v7  ;;  %v829_v61 = vmul.f32 %v822_v58, %v2456_v45  ;;  %v839_v62 = vcombine.high %v838_v59, %v838_v59  ;;  %v846_v63 = vrot.slane %v838_v59, %v2344_v23 }
 0x4b8   :  { %v830_v0 = vmul.f32 %v2450_v42, %v826_v60  ;;  %v853_v1 = vrot.slane %v839_v62, %v2344_v23  ;;  %v857_v4 = vrot.slane %v846_v63, %v2335_v7 }
 0x4ba   :  { %v861_v6 = vrot.slane %v853_v1, %v2335_v7  ;;  %v864_v8 = vadd.f32 %v857_v4, %v829_v61 }
 0x4bc   :  { %v865_v14 = vadd.f32 %v861_v6, %v830_v0  ;;  %v866_v15 = vmul.f32 0.2, %v864_v8 }
 0x4be   :  { %v867_v17 = vmul.f32 0.2, %v865_v14  ;;  %v2512_v18 = vmax.f32 %v864_v8, %v866_v15 }
 0x4c0   :  { %v2514_v19 = vmax.f32 %v865_v14, %v867_v17  ;;  %v882_v45 = vadd.f32 %v877_v12, %v2512_v18 }
 0x4c2   :  { %v883_v42 = vadd.f32 %v879_v21, %v2514_v19  ;;  %v886_v22 = vrot.slane %v882_v45, 6  ;;  %v894_v24 = vrot.slane %v882_v45, 7  ;;  %v902_v31 = vmul.f32 %v882_v45, %v2384_v11 }
 0x4c4   :  { %v887_v26 = vrot.slane %v883_v42, 6  ;;  %v892_v27 = vmul.f32 %v886_v22, %v2366_v5  ;;  %v895_v28 = vrot.slane %v883_v42, 7  ;;  %v900_v29 = vmul.f32 %v894_v24, %v2377_v10 }
 0x4c5   :  { %v903_v34 = vmul.f32 %v883_v42, %v2384_v11 }
 0x4c6   :  { %v893_v30 = vmul.f32 %v887_v26, %v2366_v5  ;;  %v901_v13 = vmul.f32 %v895_v28, %v2377_v10  ;;  %v904_v32 = vadd.f32 %v900_v29, %v892_v27 }
 0x4c8   :  { %v905_v35 = vadd.f32 %v901_v13, %v893_v30  ;;  %v906_v36 = vadd.f32 %v904_v32, %v902_v31  ;;  %v1825_v32 = vld [vmem:[%s2670_s7 + $0x68] sm:$0xff] }
 0x4ca   :  { %v907_v37 = vadd.f32 %v905_v35, %v903_v34  ;;  %v916_v38 = vadd.f32 %v1806_v33, %v906_v36  ;;  %v1826_v34 = vld [vmem:[%s2670_s7 + $0x70] sm:$0xff] }
 0x4cc   :  { %v917_v16 = vadd.f32 %v1806_v33, %v907_v37  ;;  %1921 = vmatprep.mubr.msk.f32.mxu1 %vm493_vm4, %v916_v38  ;;  %v1817_v38 = vld [vmem:[%s2673_s10 + $0x1] ss:$0 sm:$0xff] }
 0x4ce   :  { %1922 = vmatmul.mubr.msk.f32.vlgmr.msra.gmra.mrb[8].mxu1 %vm493_vm4, %v917_v16 }
 0x4cf   :  { %1938 = vmatpush3.msra.mxu1 %v2473_v25  ;;  %1939 = vmatprep.mubr.msk.f32.mxu1 %vm2105_vm5, %v2101_v50 }
 0x5a1   :  { %v2532_v20 = vpop.f32.mrb[8].mxu1 }
 0x5a2   :  { %v1012_v43 = vsel %vm493_vm4, %v2532_v20, 0.0  ;;  %v1020_v44 = vmul.f32 %v2532_v20, %v2532_v20  ;;  %v2538_v46 = vpop.f32.mrb[9].mxu1 }
 0x5a3   :  { %v1013_v47 = vrot.slane %v1012_v43, 4  ;;  %v1005_v48 = vsel %vm493_vm4, %v2538_v46, 0.0  ;;  %v1019_v49 = vmul.f32 %v2538_v46, %v2538_v46 }
 0x5a4   :  { %v1028_v51 = vsel %vm493_vm4, %v1020_v44, 0.0  ;;  %v1006_v52 = vrot.slane %v1005_v48, 4 }
 0x5a5   :  { %v1014_v53 = vadd.f32 %v1013_v47, %v1012_v43  ;;  %v1029_v54 = vrot.slane %v1028_v51, 4  ;;  %v1021_v55 = vsel %vm493_vm4, %v1019_v49, 0.0 }
 0x5a6   :  { %v1007_v56 = vadd.f32 %v1006_v52, %v1005_v48  ;;  %v1022_v57 = vrot.slane %v1021_v55, 4  ;;  %v1819_v48 = vld [vmem:[%s2674_s11 + $0x1] ss:$0 sm:$0xff] }
 0x5a7   :  { %v1015_v58 = vrot.slane %v1014_v53, 2  ;;  %v1030_v59 = vadd.f32 %v1029_v54, %v1028_v51 }
 0x5a8   :  { %v1008_v60 = vrot.slane %v1007_v56, 2  ;;  %v1023_v61 = vadd.f32 %v1022_v57, %v1021_v55 }
 0x5a9   :  { %v1016_v62 = vadd.f32 %v1015_v58, %v1014_v53  ;;  %v1031_v63 = vrot.slane %v1030_v59, 2 }
 0x5aa   :  { %v1009_v0 = vadd.f32 %v1008_v60, %v1007_v56  ;;  %v1024_v1 = vrot.slane %v1023_v61, 2 }
 0x5ab   :  { %v1017_v4 = vrot.slane %v1016_v62, 1  ;;  %v1032_v6 = vadd.f32 %v1031_v63, %v1030_v59  ;;  %v1310_v59 = vpop.permute.xlu1 %1309 }
 0x5ac   :  { %v1010_v8 = vrot.slane %v1009_v0, 1  ;;  %v1025_v12 = vadd.f32 %v1024_v1, %v1023_v61 }
 0x5ad   :  { %v1018_v14 = vadd.f32 %v1017_v4, %v1016_v62  ;;  %v1033_v15 = vrot.slane %v1032_v6, 1 }
 0x5ae   :  { %v1011_v17 = vadd.f32 %v1010_v8, %v1009_v0  ;;  %v1026_v45 = vrot.slane %v1025_v12, 1 }
 0x5af   :  { %v1034_v21 = vadd.f32 %v1033_v15, %v1032_v6 }
 0x5b0   :  { %v1027_v42 = vadd.f32 %v1026_v45, %v1025_v12  ;;  %v1037_v22 = vsel %vm107_vm1, %v1018_v14, %v1011_v17  ;;  %v1312_v12 = vpop.permute.xlu1 %1311  ;;  %v1298_v17 = vpop.permute.xlu0 %1297 }
 0x5b2   :  { %v1041_v24 = vsel %vm116_vm2, %v1034_v21, %v1027_v42 }
 0x5b3   :  { %v1043_v26 = vsel %vm121_vm3, %v1037_v22, %v1041_v24 }
 0x5b4   :  { %1935 = vmatmul.mubr.msk.f32.vlgmr.msra.gmra.mrb[2].mxu0 %vm493_vm4, %v1043_v26 }
 0x5b5   :  { %2049 = vmatpush3.bf16.msra.mxu0 %v2419_v39  ;;  %1965 = vmatprep.mubr.msk.f32.mxu0 %vm2105_vm5, %v2101_v50  ;;  %v1822_v39 = vld [vmem:[%s2670_s7 + $0x50] sm:$0xff] }
 0x5b6   :  { %2050 = vmatprep.subr.bf16.mxu0 %v2100_v3  ;;  %v1823_v3 = vld [vmem:[%s2670_s7 + $0x58] sm:$0xff] }
 0x5b9   :  { %2052 = vmatpush3.bf16.msra.mxu0 %v2431_v40  ;;  %v2039_v40 = vpack.c.bf16 %v1823_v3, %v1822_v39 }
 0x5ba   :  { %1963 = vmatprep.subr.mxu0 %v2101_v50 }
 0x5bb   :  { %2040 = vmatprep.subr.bf16.mxu1 %v2039_v40 }
 0x5bd   :  { %1964 = vmatpush3.msra.mxu0 %v2439_v41  ;;  %v1824_v41 = vld [vmem:[%s2670_s7 + $0x60] sm:$0xff]  ;;  %s2106_s7 = smov 40  }
 0x5be   :  { %v2043_v33 = vpack.c.bf16 %v1825_v32, %v1824_v41 }
 0x687   :  { %v1113_v27 = vpop.f32.mrb[2].mxu0 }
 0x688   :  { %v1117_v28 = vmul.f32 %v1113_v27, %v1113_v27  ;;  %v1936_v29 = vpop.f32.mrb[3].mxu0 }
 0x68a   :  { %v1119_v30 = vrot.slane %v1117_v28, 6 }
 0x68c   :  { %v1121_v13 = vsub.f32 %v1113_v27, %v1119_v30 }
 0x68e   :  { %v1122_v31 = vsel %vm121_vm3, %v1113_v27, %v1121_v13 }
 0x68f   :  { %1940 = vmatmul.mubr.msk.f32.vlgmr.msra.gmra.mrb[10].mxu1 %vm699_vm6, %v1122_v31 }
 0x690   :  { %2042 = vmatpush3.bf16.msra.mxu1 %v2039_v40 }
 0x691   :  { %2044 = vmatprep.subr.bf16.mxu1 %v2043_v33 }
 0x694   :  { %2046 = vmatpush3.bf16.msra.mxu1 %v2043_v33 }
 0x695   :  { %1950 = vmatprep.subr.mxu1 %v1826_v34 }
 0x698   :  { %1951 = vmatpush3.msra.mxu1 %v1826_v34 }
 0x699   :  { %1968 = vmatprep.subr.mxu1 %v2101_v50 }
 0x762   :  { %v1192_v35 = vpop.f32.mrb[10].mxu1 }
 0x763   :  { %v1196_v36 = vadd.f32 1e-05, %v1192_v35  ;;  %v1941_v37 = vpop.f32.mrb[11].mxu1 }
 0x765   :  { %2070 = vrsqrt.f32 %v1196_v36  ;;  %v1821_v36 = vld [vmem:[%s2669_s6 + $0x2] ss:$0 sm:$0xff] }
 0x76f   :  { %v2071_v16 = vpop.eup %2070 }
 0x770   :  { %v1206_v43 = vmul.f32 %v2071_v16, %v1817_v38 }
 0x772   :  { %v1210_v44 = vrot.slane %v1206_v43, 2  ;;  %v1226_v47 = vrot.slane %v1206_v43, %v2344_v23 }
 0x774   :  { %v1212_v49 = vmul.f32 %v1210_v44, %v1192_v35  ;;  %v1227_v51 = vcombine.high %v1226_v47, %v1226_v47  ;;  %v1234_v52 = vrot.slane %v1226_v47, %v2344_v23 }
 0x776   :  { %v1219_v53 = vsub.f32 %v1819_v48, %v1212_v49  ;;  %v1242_v54 = vcombine.high %v1234_v52, %v1234_v52  ;;  %v1241_v55 = vrot.slane %v1227_v51, %v2344_v23 }
 0x778   :  { %v1263_v56 = vrot.slane %v1219_v53, %v2344_v23  ;;  %v1247_v57 = vrot.slane %v1242_v54, %v2335_v7  ;;  %v1243_v58 = vcombine.high %v1241_v55, %v1241_v55 }
 0x77a   :  { %v1264_v60 = vcombine.high %v1263_v56, %v1263_v56  ;;  %v1271_v61 = vrot.slane %v1263_v56, %v2344_v23  ;;  %v1254_v62 = vmul.f32 %v1247_v57, %v2538_v46  ;;  %v1251_v63 = vrot.slane %v1243_v58, %v2335_v7  ;;  %v1300_v46 = vpop.permute.xlu1 %1299 }
 0x77c   :  { %v1282_v0 = vrot.slane %v1271_v61, %v2335_v7  ;;  %v1255_v1 = vmul.f32 %v2532_v20, %v1251_v63  ;;  %v1278_v4 = vrot.slane %v1264_v60, %v2344_v23 }
 0x77e   :  { %v1289_v6 = vadd.f32 %v1282_v0, %v1254_v62  ;;  %v1286_v8 = vrot.slane %v1278_v4, %v2335_v7 }
 0x780   :  { %v1291_v14 = vmul.f32 0.2, %v1289_v6  ;;  %v1290_v15 = vadd.f32 %v1286_v8, %v1255_v1 }
 0x782   :  { %v1293_v45 = vmax.f32 %v1289_v6, %v1291_v14  ;;  %v1292_v21 = vmul.f32 0.2, %v1290_v15 }
 0x784   :  { %v1303_v42 = vadd.f32 %v1298_v17, %v1293_v45  ;;  %v1315_v22 = vadd.f32 %v1310_v59, %v1293_v45  ;;  %v1294_v24 = vmax.f32 %v1290_v15, %v1292_v21 }
 0x786   :  { %v1305_v26 = vmul.f32 0.2, %v1303_v42  ;;  %v1319_v27 = vrot.slane %v1315_v22, 6  ;;  %v1327_v28 = vrot.slane %v1315_v22, 7  ;;  %v1304_v29 = vadd.f32 %v1300_v46, %v1294_v24 }
 0x787   :  { %v1316_v20 = vadd.f32 %v1312_v12, %v1294_v24  ;;  %v1335_v41 = vmul.f32 %v1315_v22, %v2384_v11 }
 0x788   :  { %v1307_v30 = vmax.f32 %v1303_v42, %v1305_v26  ;;  %v1325_v13 = vmul.f32 %v1319_v27, %v2366_v5  ;;  %v1333_v31 = vmul.f32 %v1327_v28, %v2377_v10  ;;  %v1306_v39 = vmul.f32 0.2, %v1304_v29 }
 0x789   :  { %v1320_v3 = vrot.slane %v1316_v20, 6  ;;  %v1328_v40 = vrot.slane %v1316_v20, 7  ;;  %v1336_v38 = vmul.f32 %v1316_v20, %v2384_v11 }
 0x78a   :  { %1754 = vrot.lane.b32.xlu0 %v1307_v30, %s2106_s7  ;;  %v1337_v32 = vadd.f32 %v1333_v31, %v1325_v13  ;;  %v1308_v33 = vmax.f32 %v1304_v29, %v1306_v39 }
 0x78b   :  { %v1326_v34 = vmul.f32 %v1320_v3, %v2366_v5  ;;  %v1334_v35 = vmul.f32 %v1328_v40, %v2377_v10  ;;  %v1832_v3 = vld [vmem:[%s2673_s10 + $0x2] ss:$0 sm:$0xff]  ;;  %s2107_s10 = smov 80  }
 0x78c   :  { %v1339_v37 = vadd.f32 %v1337_v32, %v1335_v41  ;;  %1756 = vrot.lane.b32.xlu1 %v1308_v33, %s2106_s7 }
 0x78d   :  { %v1338_v16 = vadd.f32 %v1334_v35, %v1326_v34  ;;  %v1834_v34 = vld [vmem:[%s2674_s11 + $0x2] ss:$0 sm:$0xff] }
 0x78e   :  { %v1349_v43 = vadd.f32 %v1821_v36, %v1339_v37 }
 0x78f   :  { %v1340_v44 = vadd.f32 %v1338_v16, %v1336_v38 }
 0x790   :  { %1952 = vmatprep.mubr.msk.f32.mxu1 %vm493_vm4, %v1349_v43 }
 0x791   :  { %v1350_v47 = vadd.f32 %v1821_v36, %v1340_v44 }
 0x793   :  { %1953 = vmatmul.mubr.msk.f32.vlgmr.msra.gmra.mrb[12].mxu1 %vm493_vm4, %v1350_v47 }
 0x794   :  { %1969 = vmatpush3.msra.mxu1 %v2473_v25  ;;  %1970 = vmatprep.mubr.msk.f32.mxu1 %vm2105_vm5, %v2101_v50 }
 0x866   :  { %v2607_v5 = vpop.f32.mrb[12].mxu1 }
 0x867   :  { %v1445_v10 = vsel %vm493_vm4, %v2607_v5, 0.0  ;;  %v1453_v11 = vmul.f32 %v2607_v5, %v2607_v5  ;;  %v1429_v48 = vpop.f32.mrb[13].mxu1 }
 0x868   :  { %v1446_v49 = vrot.slane %v1445_v10, 4  ;;  %v1438_v51 = vsel %vm493_vm4, %v1429_v48, 0.0  ;;  %v1452_v52 = vmul.f32 %v1429_v48, %v1429_v48 }
 0x869   :  { %v1461_v53 = vsel %vm493_vm4, %v1453_v11, 0.0  ;;  %v1439_v54 = vrot.slane %v1438_v51, 4 }
 0x86a   :  { %v1447_v25 = vadd.f32 %v1446_v49, %v1445_v10  ;;  %v1462_v55 = vrot.slane %v1461_v53, 4  ;;  %v1454_v50 = vsel %vm493_vm4, %v1452_v52, 0.0 }
 0x86b   :  { %v1440_v56 = vadd.f32 %v1439_v54, %v1438_v51  ;;  %v1455_v57 = vrot.slane %v1454_v50, 4 }
 0x86c   :  { %v1448_v58 = vrot.slane %v1447_v25, 2  ;;  %v1463_v59 = vadd.f32 %v1462_v55, %v1461_v53 }
 0x86d   :  { %v1441_v60 = vrot.slane %v1440_v56, 2  ;;  %v1456_v61 = vadd.f32 %v1455_v57, %v1454_v50 }
 0x86e   :  { %v1449_v62 = vadd.f32 %v1448_v58, %v1447_v25  ;;  %v1464_v63 = vrot.slane %v1463_v59, 2 }
 0x86f   :  { %v1442_v0 = vadd.f32 %v1441_v60, %v1440_v56  ;;  %v1457_v1 = vrot.slane %v1456_v61, 2  ;;  %v1729_v60 = vpop.permute.xlu0 %1728 }
 0x870   :  { %v1450_v4 = vrot.slane %v1449_v62, 1  ;;  %v1465_v6 = vadd.f32 %v1464_v63, %v1463_v59  ;;  %v1731_v63 = vpop.permute.xlu1 %1730 }
 0x871   :  { %v1443_v8 = vrot.slane %v1442_v0, 1  ;;  %v1458_v12 = vadd.f32 %v1457_v1, %v1456_v61 }
 0x872   :  { %v1451_v14 = vadd.f32 %v1450_v4, %v1449_v62  ;;  %v1466_v15 = vrot.slane %v1465_v6, 1 }
 0x873   :  { %v1444_v17 = vadd.f32 %v1443_v8, %v1442_v0  ;;  %v1459_v45 = vrot.slane %v1458_v12, 1 }
 0x874   :  { %v1467_v21 = vadd.f32 %v1466_v15, %v1465_v6  ;;  %v2075_v6 = vld [vmem:[%s2663_s0 + $0x10] sm:$0xff] }
 0x875   :  { %v1460_v42 = vadd.f32 %v1459_v45, %v1458_v12  ;;  %v1470_v22 = vsel %vm107_vm1, %v1451_v14, %v1444_v17  ;;  %v871_v8 = vadd.f32 %v2075_v6, %v2514_v19  ;;  %v1742_v15 = vadd.f32 %v2075_v6, %v2372_v9  ;;  %v1755_v17 = vpop.permute.xlu0 %1754 }
 0x877   :  { %v1474_v46 = vsel %vm116_vm2, %v1467_v21, %v1460_v42  ;;  %v873_v45 = vmul.f32 0.2, %v871_v8 }
 0x878   :  { %v1476_v24 = vsel %vm121_vm3, %v1470_v22, %v1474_v46  ;;  %v1757_v22 = vpop.permute.xlu1 %1756  ;;  %v1746_v46 = vmul.f32 0.2, %v1742_v15 }
 0x879   :  { %1966 = vmatmul.mubr.msk.f32.vlgmr.msra.gmra.mrb[4].mxu0 %vm493_vm4, %v1476_v24  ;;  %v875_v24 = vmax.f32 %v871_v8, %v873_v45 }
 0x87a   :  { %v1750_v9 = vmax.f32 %v1742_v15, %v1746_v46 }
 0x94c   :  { %v1546_v26 = vpop.f32.mrb[4].mxu0 }
 0x94d   :  { %v1550_v27 = vmul.f32 %v1546_v26, %v1546_v26  ;;  %v1967_v28 = vpop.f32.mrb[5].mxu0 }
 0x94f   :  { %v1552_v29 = vrot.slane %v1550_v27, 6 }
 0x951   :  { %v1554_v20 = vsub.f32 %v1546_v26, %v1552_v29 }
 0x953   :  { %v1555_v30 = vsel %vm121_vm3, %v1546_v26, %v1554_v20 }
 0x954   :  { %1971 = vmatmul.mubr.msk.f32.vlgmr.msra.gmra.mrb[14].mxu1 %vm699_vm6, %v1555_v30 }
 0xa27   :  { %v1625_v13 = vpop.f32.mrb[14].mxu1 }
 0xa28   :  { %v1629_v31 = vadd.f32 1e-05, %v1625_v13  ;;  %v1972_v39 = vpop.f32.mrb[15].mxu1 }
 0xa2a   :  { %2072 = vrsqrt.f32 %v1629_v31 }
 0xa34   :  { %v2073_v40 = vpop.eup %2072 }
 0xa35   :  { %v1639_v41 = vmul.f32 %v2073_v40, %v1832_v3 }
 0xa37   :  { %v1643_v32 = vrot.slane %v1639_v41, 2  ;;  %v1659_v33 = vrot.slane %v1639_v41, %v2344_v23 }
 0xa39   :  { %v1645_v35 = vmul.f32 %v1643_v32, %v1625_v13  ;;  %v1660_v36 = vcombine.high %v1659_v33, %v1659_v33  ;;  %v1667_v37 = vrot.slane %v1659_v33, %v2344_v23 }
 0xa3b   :  { %v1652_v38 = vsub.f32 %v1834_v34, %v1645_v35  ;;  %v1674_v16 = vrot.slane %v1660_v36, %v2344_v23  ;;  %v1675_v43 = vcombine.high %v1667_v37, %v1667_v37 }
 0xa3d   :  { %v1676_v44 = vcombine.high %v1674_v16, %v1674_v16  ;;  %v1680_v47 = vrot.slane %v1675_v43, %v2335_v7  ;;  %v1696_v10 = vrot.slane %v1652_v38, %v2344_v23 }
 0xa3f   :  { %v1697_v11 = vcombine.high %v1696_v10, %v1696_v10  ;;  %v1704_v49 = vrot.slane %v1696_v10, %v2344_v23  ;;  %v1687_v51 = vmul.f32 %v1680_v47, %v1429_v48  ;;  %v1684_v52 = vrot.slane %v1676_v44, %v2335_v7 }
 0xa41   :  { %v1711_v53 = vrot.slane %v1697_v11, %v2344_v23  ;;  %v1715_v54 = vrot.slane %v1704_v49, %v2335_v7  ;;  %v1688_v25 = vmul.f32 %v2607_v5, %v1684_v52 }
 0xa43   :  { %v1719_v55 = vrot.slane %v1711_v53, %v2335_v7  ;;  %v1722_v50 = vadd.f32 %v1715_v54, %v1687_v51  ;;  %v2074_v7 = vld [vmem:[%s2663_s0] sm:$0xff]  ;;  %s2108_s0 = smov [#allocation2]  }
 0xa44   :  { %v870_v5 = vadd.f32 %v2074_v7, %v2512_v18  ;;  %v1740_v12 = vadd.f32 %v2074_v7, %v2361_v2  ;;  %s1785_s13 = sshll.u32 %s2108_s0, 4  ;;  %v1769_v2 = vsel %vm493_vm4, %v875_v24, %v1757_v22  ;;  %s1786_s13 = int_to_ptr.vmem [resolvable:$true] %s1785_s13 }
 0xa45   :  { %v1724_v56 = vmul.f32 0.2, %v1722_v50  ;;  %v1723_v57 = vadd.f32 %v1719_v55, %v1688_v25  ;;  %s2076_s4 = scalar_lea.vmem %s1786_s13, 512  ;;  %p2081_p1 = scmp.lt.s32.totalorder %s1786_s13, %s1786_s13 }
 0xa46   :  { %v872_v14 = vmul.f32 0.2, %v870_v5  ;;  %v1744_v21 = vmul.f32 0.2, %v1740_v12  ;;  %p2077_p0 = scmp.ne.s32.totalorder %s1786_s13, %s2076_s4  ;;  %p2082_p2 = scmp.lt.s32.totalorder %s2076_s4, %s2076_s4 }
 0xa47   :  { %v1726_v58 = vmax.f32 %v1722_v50, %v1724_v56  ;;  %v1725_v59 = vmul.f32 0.2, %v1723_v57 }
 0xa48   :  { %v874_v42 = vmax.f32 %v870_v5, %v872_v14  ;;  %v1748_v26 = vmax.f32 %v1740_v12, %v1744_v21  ;;  %p2083_p3 = por %p2082_p2, %p2081_p1 }
 0xa49   :  { %v1734_v61 = vadd.f32 %v1729_v60, %v1726_v58  ;;  %v1727_v62 = vmax.f32 %v1723_v57, %v1725_v59 }
 0xa4a   :  { %v1768_v18 = vsel %vm493_vm4, %v874_v42, %v1755_v17  ;;  %p2084_p4 = pnand %p2083_p3, %p2077_p0 }
 0xa4b   :  { %v1736_v48 = vmul.f32 0.2, %v1734_v61  ;;  %v1735_v0 = vadd.f32 %v1731_v63, %v1727_v62 }
 0xa4d   :  { %v1738_v1 = vmax.f32 %v1734_v61, %v1736_v48  ;;  %v1737_v4 = vmul.f32 0.2, %v1735_v0 }
 0xa4f   :  { %1762 = vrot.lane.b32.xlu0 %v1738_v1, %s2107_s10  ;;  %v1739_v23 = vmax.f32 %v1735_v0, %v1737_v4 }
 0xa51   :  { %1764 = vrot.lane.b32.xlu1 %v1739_v23, %s2107_s10 }
 0xac1   :  { %v1763_v27 = vpop.permute.xlu0 %1762 }
 0xac2   :  { %v1771_v19 = vsel %vm1770_vm7, %v1768_v18, %v1763_v27 }
 0xac3   :  { %v1774_v28 = vsel %vm1773_vm8, %v1771_v19, %v1748_v26  ;;  %v1765_v29 = vpop.permute.xlu1 %1764 }
 0xac4   :  { %1776 = vst [vmem:[#allocation2] sm:$0xff] %v1774_v28  ;;  %v1772_v20 = vsel %vm1770_vm7, %v1769_v2, %v1765_v29 }
 0xac5   :  { %v1775_v30 = vsel %vm1773_vm8, %v1772_v20, %v1750_v9 }
 0xac6   :  { %1778 = vst [vmem:[#allocation2 + $0x10] sm:$0xff] %v1775_v30 }
 0xac7   :  { %2087 = shalt.err (!%p2084_p4)
}
 0xac8   :  { %s2088_s3 = scalar_lea.hbm %s2675_s12, 512 }
 0xac9   :  { %p2089_p5 = scmp.ne.s32.totalorder %s2675_s12, %s2088_s3  ;;  %p2092_p6 = scmp.lt.u32.totalorder %s2088_s3, %s2675_s12 }
 0xacb   :  { %p2094_p7 = pnand %p2092_p6, %p2089_p5 }
 0xacd   :  { %2097 = shalt.err (!%p2094_p7)
}
 0xace   :  { %s2109_s20 = smov 256   ;;  %s2110_s8 = smov 16  }
 0xacf   :  { %1791 = dma.vmem_to_hbm [thread:$0]  %s1786_s13, 512, %s2675_s12, [#allocation3], %s2109_s20, %s2109_s20, %s2110_s8  }
 0xad0   :  { %2098 = dma.done.wait [#allocation3], 512  }
 0xad1   :  { %2099 = vsyncadd [#allocation3], 4294966784 }
 0xad2   :  { %1795 = vsyncpa [#allocation3], 1 }

</bundles_post_ra>
